<compile_context>
chip_gen: v5e
topology: v5e:2x2
jax: 0.10.0
libtpu: 0.0.40
codegen_flags: <defaults>
</compile_context>

<pallas_src>
import functools

import jax
import jax.numpy as jnp
from jax.experimental import pallas as pl
from jax.experimental.pallas import tpu as pltpu


def mlp_kernel(x_ref, bn_ref, w1_ref, w2_ref, w3_ref, b_ref, o_ref):
    d1 = w1_ref.shape[1]
    d2 = w2_ref.shape[1]
    nc = w3_ref.shape[1]
    # layer1: (tm, K) @ (K, d1) -> (tm, d1), bf16 operands, f32 accumulate.
    h1 = jnp.dot(x_ref[...], w1_ref[...], preferred_element_type=jnp.float32)
    h1 = h1 + b_ref[0:1, :d1]                       # (1, d1): sublane broadcast
    # BatchNorm2d(59) eval-mode folded to a per-row scale/shift (the row index
    # m = (n, c, h) carries the channel c the statistics are indexed by):
    scale = bn_ref[:, 0:1].astype(jnp.float32)      # (tm, 1): lane broadcast
    shift = bn_ref[:, 1:2].astype(jnp.float32)
    h1 = jnp.maximum(h1 * scale + shift, 0.0)       # ReLU (Dropout = identity)
    # layer2: (tm, d1) @ (d1, d2) -> (tm, d2)
    h2 = jnp.dot(h1.astype(w2_ref.dtype), w2_ref[...],
                 preferred_element_type=jnp.float32)
    h2 = jnp.maximum(h2 + b_ref[1:2, :d2], 0.0)
    # layer3: (tm, d2) @ (d2, nc) -> (tm, nc), written in natural layout.
    o_ref[...] = jnp.dot(h2.astype(w3_ref.dtype), w3_ref[...],
                         preferred_element_type=jnp.float32) + b_ref[2:3, :nc]


def _round_up(n, m):
    return ((n + m - 1) // m) * m


@functools.partial(jax.jit, static_argnames=("tile_m",))
def custom_mlp_forward(x, params, tile_m=4096):
    w1, b1, w2, b2, w3, b3, gamma, beta, rmean, rvar = params
    N, C, H, K = x.shape
    d1 = w1.shape[1]
    d2 = w2.shape[1]
    nc = w3.shape[1]
    eps = 1e-5

    # Fold BatchNorm2d (eval) into per-channel scale/shift, then per-row.
    scale = gamma * jax.lax.rsqrt(rvar + eps)        # (C,)
    shift = beta - rmean * scale                     # (C,)

    M = N * C * H
    dot_dtype = jnp.bfloat16

    # Natural layout: reshape is free; the bf16 cast is elementwise (XLA fuses
    # it with x's producer).  No transpose / pad pass over x.
    xr = x.reshape(M, K).astype(dot_dtype)           # (M, K)
    bn = jnp.stack(                                  # (M, 2): one slim stream
        [jnp.broadcast_to(scale[None, :, None], (N, C, H)).reshape(M),
         jnp.broadcast_to(shift[None, :, None], (N, C, H)).reshape(M)],
        axis=-1).astype(dot_dtype)

    # Biases packed into a single operand (fewer DMA streams at tiny M).
    bw = max(d1, d2, nc)
    b_pack = jnp.zeros((3, bw), jnp.float32)
    b_pack = b_pack.at[0, :d1].set(b1).at[1, :d2].set(b2).at[2, :nc].set(b3)

    # Row tiling: one full-extent block for small M; otherwise >= 2 row tiles
    # (lets the "parallel" axis shard across the two v7x TensorCores), capped
    # at ~tile_m rows to stay inside scoped VMEM.  The last block's OOB tail is
    # masked by Pallas, so no input padding is needed.
    if M <= 1024:
        tm = M
    else:
        n_steps = max(2, pl.cdiv(M, tile_m))
        tm = _round_up(pl.cdiv(M, n_steps), 8)
    grid = (pl.cdiv(M, tm),)

    flops = 2 * M * (K * d1 + d1 * d2 + d2 * nc)
    bytes_accessed = (xr.size * 2 + bn.size * 2 + M * nc * 4
                      + (K * d1 + d1 * d2 + d2 * nc) * 2 + 3 * bw * 4)

    out = pl.pallas_call(
        mlp_kernel,
        out_shape=jax.ShapeDtypeStruct((M, nc), jnp.float32),
        grid_spec=pltpu.PrefetchScalarGridSpec(
            num_scalar_prefetch=0,
            grid=grid,
            in_specs=[
                pl.BlockSpec((tm, K), lambda i: (i, 0)),    # x rows (natural)
                pl.BlockSpec((tm, 2), lambda i: (i, 0)),    # BN scale/shift
                pl.BlockSpec((K, d1), lambda i: (0, 0)),    # W1
                pl.BlockSpec((d1, d2), lambda i: (0, 0)),   # W2
                pl.BlockSpec((d2, nc), lambda i: (0, 0)),   # W3
                pl.BlockSpec((3, bw), lambda i: (0, 0)),    # packed biases
            ],
            out_specs=pl.BlockSpec((tm, nc), lambda i: (i, 0)),
        ),
        compiler_params=pltpu.CompilerParams(
            dimension_semantics=("parallel",),
            vmem_limit_bytes=48 * 1024 * 1024),
        cost_estimate=pl.CostEstimate(
            flops=flops, transcendentals=0, bytes_accessed=bytes_accessed),
    )(xr, bn,
      w1.astype(dot_dtype), w2.astype(dot_dtype), w3.astype(dot_dtype), b_pack)

    out = out.reshape(N, C, H, nc)                   # free: no transpose
    # torch .squeeze(dim=1): only squeezes if that axis has size 1 (here C=59,
    # so it is a no-op, but reproduce the semantics anyway).
    if out.shape[1] == 1:
        out = jnp.squeeze(out, axis=1)
    return out


def init_params(key, input_size, num_class):
    """Deterministic init mimicking PyTorch defaults (uniform +/- 1/sqrt(fan_in))."""
    ks = jax.random.split(key, 8)

    def linear(kw, kb, fan_in, fan_out):
        bound = 1.0 / jnp.sqrt(fan_in)
        w = jax.random.uniform(kw, (fan_in, fan_out), jnp.float32, -bound, bound)
        b = jax.random.uniform(kb, (fan_out,), jnp.float32, -bound, bound)
        return w, b

    w1, b1 = linear(ks[0], ks[1], input_size, 59)
    w2, b2 = linear(ks[2], ks[3], 59, 18)
    w3, b3 = linear(ks[4], ks[5], 18, num_class)
    # BatchNorm2d(59): gamma=1, beta=0; give running stats nontrivial values.
    gamma = jnp.ones((59,), jnp.float32)
    beta = jnp.zeros((59,), jnp.float32)
    rmean = 0.1 * jax.random.normal(ks[6], (59,), jnp.float32)
    rvar = 1.0 + 0.1 * jax.random.uniform(ks[7], (59,), jnp.float32)
    return (w1, b1, w2, b2, w3, b3, gamma, beta, rmean, rvar)


def reference_forward(x, params):
    """Pure-JAX f32 reference reproducing the eval-mode PyTorch forward."""
    w1, b1, w2, b2, w3, b3, gamma, beta, rmean, rvar = params
    eps = 1e-5
    h = x @ w1 + b1                                   # (N, C, H, 59)
    h = (h - rmean[None, :, None, None]) / jnp.sqrt(rvar + eps)[None, :, None, None]
    h = h * gamma[None, :, None, None] + beta[None, :, None, None]
    h = jnp.maximum(h, 0.0)
    h = jnp.maximum(h @ w2 + b2, 0.0)
    out = h @ w3 + b3
    if out.shape[1] == 1:
        out = jnp.squeeze(out, axis=1)
    return out


if __name__ == "__main__":
    input_size = 16
    num_class = 10
    N, C, H = 2, 59, 4   # C must be 59 so BatchNorm2d(59) is valid

    key = jax.random.PRNGKey(0)
    k_x, k_p = jax.random.split(key)
    x = jax.random.normal(k_x, (N, C, H, input_size), jnp.float32)
    params = init_params(k_p, input_size, num_class)

    out = custom_mlp_forward(x, params)
    out = jax.block_until_ready(out)

    ref = reference_forward(x, params)
    assert out.shape == ref.shape == (N, C, H, num_class)
    # Tolerance accounts for bf16 dot operands / bf16 BN affine (f32 accumulate).
    assert jnp.allclose(out, ref, atol=3e-2, rtol=3e-2), (
        float(jnp.max(jnp.abs(out - ref))))

    print("KERNEL_OK")
</pallas_src>

<mosaic_0001>
module attributes {stable_mosaic.version = 11 : i64} {
  func.func @mlp_kernel(%arg0: i32, %arg1: memref<472x16xbf16, #tpu.memory_space<vmem>>, %arg2: memref<472x2xbf16, #tpu.memory_space<vmem>>, %arg3: memref<16x59xbf16, #tpu.memory_space<vmem>>, %arg4: memref<59x18xbf16, #tpu.memory_space<vmem>>, %arg5: memref<18x10xbf16, #tpu.memory_space<vmem>>, %arg6: memref<3x59xf32, #tpu.memory_space<vmem>>, %arg7: memref<472x10xf32, #tpu.memory_space<vmem>>) attributes {dimension_semantics = [#tpu.dimension_semantics<parallel>], iteration_bounds = array<i64: 1>, scalar_prefetch = 0 : i64, scratch_operands = 0 : i64, tpu.core_type = #tpu.core_type<tc>, window_params = [{transform_indices = @transform_0, window_bounds = array<i64: 472, 16>}, {transform_indices = @transform_1, window_bounds = array<i64: 472, 2>}, {pipeline_mode = #tpu.pipeline_mode<synchronous>, transform_indices = @transform_2, window_bounds = array<i64: 16, 59>}, {pipeline_mode = #tpu.pipeline_mode<synchronous>, transform_indices = @transform_3, window_bounds = array<i64: 59, 18>}, {pipeline_mode = #tpu.pipeline_mode<synchronous>, transform_indices = @transform_4, window_bounds = array<i64: 18, 10>}, {pipeline_mode = #tpu.pipeline_mode<synchronous>, transform_indices = @transform_5, window_bounds = array<i64: 3, 59>}, {transform_indices = @transform_6, window_bounds = array<i64: 472, 10>}]} {
    %c0 = arith.constant 0 : index
    %c0_0 = arith.constant 0 : index
    %0 = vector.load %arg1[%c0, %c0_0] : memref<472x16xbf16, #tpu.memory_space<vmem>>, vector<472x16xbf16>
    %c0_1 = arith.constant 0 : index
    %c0_2 = arith.constant 0 : index
    %1 = vector.load %arg3[%c0_1, %c0_2] : memref<16x59xbf16, #tpu.memory_space<vmem>>, vector<16x59xbf16>
    %cst = arith.constant dense<0.000000e+00> : vector<472x59xf32>
    %2 = tpu.matmul %0, %1, %cst {dimension_numbers = #tpu.dot_dimension_numbers<[1], [0], [0], [1], [0, 0, 1, 1], [], []>} : vector<472x16xbf16>, vector<16x59xbf16>, vector<472x59xf32> -> vector<472x59xf32>
    %c0_3 = arith.constant 0 : index
    %c0_4 = arith.constant 0 : index
    %3 = vector.load %arg6[%c0_3, %c0_4] : memref<3x59xf32, #tpu.memory_space<vmem>>, vector<1x59xf32>
    %4 = vector.broadcast %3 : vector<1x59xf32> to vector<472x59xf32>
    %5 = arith.addf %2, %4 : vector<472x59xf32>
    %c0_5 = arith.constant 0 : index
    %c0_6 = arith.constant 0 : index
    %6 = vector.load %arg2[%c0_5, %c0_6] : memref<472x2xbf16, #tpu.memory_space<vmem>>, vector<472x1xbf16>
    %7 = arith.extf %6 : vector<472x1xbf16> to vector<472x1xf32>
    %c0_7 = arith.constant 0 : index
    %c1 = arith.constant 1 : index
    %8 = vector.load %arg2[%c0_7, %c1] : memref<472x2xbf16, #tpu.memory_space<vmem>>, vector<472x1xbf16>
    %9 = arith.extf %8 : vector<472x1xbf16> to vector<472x1xf32>
    %10 = vector.broadcast %7 : vector<472x1xf32> to vector<472x59xf32>
    %11 = arith.mulf %5, %10 : vector<472x59xf32>
    %12 = vector.broadcast %9 : vector<472x1xf32> to vector<472x59xf32>
    %13 = arith.addf %11, %12 : vector<472x59xf32>
    %cst_8 = arith.constant 0.000000e+00 : f32
    %14 = vector.broadcast %cst_8 : f32 to vector<472x59xf32>
    %15 = arith.maximumf %13, %14 : vector<472x59xf32>
    %16 = arith.truncf %15 : vector<472x59xf32> to vector<472x59xbf16>
    %c0_9 = arith.constant 0 : index
    %c0_10 = arith.constant 0 : index
    %17 = vector.load %arg4[%c0_9, %c0_10] : memref<59x18xbf16, #tpu.memory_space<vmem>>, vector<59x18xbf16>
    %cst_11 = arith.constant dense<0.000000e+00> : vector<472x18xf32>
    %18 = tpu.matmul %16, %17, %cst_11 {dimension_numbers = #tpu.dot_dimension_numbers<[1], [0], [0], [1], [0, 0, 1, 1], [], []>} : vector<472x59xbf16>, vector<59x18xbf16>, vector<472x18xf32> -> vector<472x18xf32>
    %c1_12 = arith.constant 1 : index
    %c0_13 = arith.constant 0 : index
    %19 = vector.load %arg6[%c1_12, %c0_13] : memref<3x59xf32, #tpu.memory_space<vmem>>, vector<1x18xf32>
    %20 = vector.broadcast %19 : vector<1x18xf32> to vector<472x18xf32>
    %21 = arith.addf %18, %20 : vector<472x18xf32>
    %cst_14 = arith.constant 0.000000e+00 : f32
    %22 = vector.broadcast %cst_14 : f32 to vector<472x18xf32>
    %23 = arith.maximumf %21, %22 : vector<472x18xf32>
    %24 = arith.truncf %23 : vector<472x18xf32> to vector<472x18xbf16>
    %c0_15 = arith.constant 0 : index
    %c0_16 = arith.constant 0 : index
    %25 = vector.load %arg5[%c0_15, %c0_16] : memref<18x10xbf16, #tpu.memory_space<vmem>>, vector<18x10xbf16>
    %cst_17 = arith.constant dense<0.000000e+00> : vector<472x10xf32>
    %26 = tpu.matmul %24, %25, %cst_17 {dimension_numbers = #tpu.dot_dimension_numbers<[1], [0], [0], [1], [0, 0, 1, 1], [], []>} : vector<472x18xbf16>, vector<18x10xbf16>, vector<472x10xf32> -> vector<472x10xf32>
    %c2 = arith.constant 2 : index
    %c0_18 = arith.constant 0 : index
    %27 = vector.load %arg6[%c2, %c0_18] : memref<3x59xf32, #tpu.memory_space<vmem>>, vector<1x10xf32>
    %28 = vector.broadcast %27 : vector<1x10xf32> to vector<472x10xf32>
    %29 = arith.addf %26, %28 : vector<472x10xf32>
    %c0_19 = arith.constant 0 : index
    %c0_20 = arith.constant 0 : index
    %30 = vector.load %arg7[%c0_19, %c0_20] : memref<472x10xf32, #tpu.memory_space<vmem>>, vector<472x10xf32>
    tpu.vector_store %arg7[%c0_19, %c0_20], %29 {strides = array<i32>} : memref<472x10xf32, #tpu.memory_space<vmem>>, vector<472x10xf32>,
    return
  }
  func.func @transform_0(%arg0: i32) -> (i32, i32) {
    %c0_i32 = arith.constant 0 : i32
    %c0_i32_0 = arith.constant 0 : i32
    return %arg0, %c0_i32 : i32, i32
  }
  func.func @transform_1(%arg0: i32) -> (i32, i32) {
    %c0_i32 = arith.constant 0 : i32
    %c0_i32_0 = arith.constant 0 : i32
    return %arg0, %c0_i32 : i32, i32
  }
  func.func @transform_2(%arg0: i32) -> (i32, i32) {
    %c0_i32 = arith.constant 0 : i32
    %c0_i32_0 = arith.constant 0 : i32
    %c0_i32_1 = arith.constant 0 : i32
    return %c0_i32, %c0_i32_0 : i32, i32
  }
  func.func @transform_3(%arg0: i32) -> (i32, i32) {
    %c0_i32 = arith.constant 0 : i32
    %c0_i32_0 = arith.constant 0 : i32
    %c0_i32_1 = arith.constant 0 : i32
    return %c0_i32, %c0_i32_0 : i32, i32
  }
  func.func @transform_4(%arg0: i32) -> (i32, i32) {
    %c0_i32 = arith.constant 0 : i32
    %c0_i32_0 = arith.constant 0 : i32
    %c0_i32_1 = arith.constant 0 : i32
    return %c0_i32, %c0_i32_0 : i32, i32
  }
  func.func @transform_5(%arg0: i32) -> (i32, i32) {
    %c0_i32 = arith.constant 0 : i32
    %c0_i32_0 = arith.constant 0 : i32
    %c0_i32_1 = arith.constant 0 : i32
    return %c0_i32, %c0_i32_0 : i32, i32
  }
  func.func @transform_6(%arg0: i32) -> (i32, i32) {
    %c0_i32 = arith.constant 0 : i32
    %c0_i32_0 = arith.constant 0 : i32
    return %arg0, %c0_i32 : i32, i32
  }
}

</mosaic_0001>

<bundles_post_ra>
// kernel: custom_mlp_forward.1
= control target key start
LH: loop header
LB: loop body
LE: loop exit
PB: predicated region body
PF: predicated region fallthrough
CT: control target
= control target key end

     0   :  { %v2806_v1 = vmov 0   ;;  %v2807_v7 = vmov 1   ;;  %vm241_vm0 = vcmask 130048   ;;  %vm1470_vm1 = vcmask 1044480   ;;  %s3700_s2 = inlined_call_operand.vmem [shape: bf16[16,59], index: 2, kind: input, shape index: {}]   ;;  %s3701_s0 = inlined_call_operand.vmem [shape: bf16[472,16], index: 0, kind: input, shape index: {}]   ;;  %s3702_s1 = inlined_call_operand.vmem [shape: bf16[472,2], index: 1, kind: input, shape index: {}]   ;;  %s3703_s5 = inlined_call_operand.vmem [shape: f32[3,59], index: 5, kind: input, shape index: {}]   ;;  %s3704_s3 = inlined_call_operand.vmem [shape: bf16[59,18], index: 3, kind: input, shape index: {}]   ;;  %s3705_s4 = inlined_call_operand.vmem [shape: bf16[18,10], index: 4, kind: input, shape index: {}]   ;;  %s3706_s6 = inlined_call_operand.vmem [shape: f32[472,10], index: 6, kind: output, shape index: {}]  }
   0x1   :  { %v2314_v0 = vld [vmem:[%s3700_s2] sm:$0xff]  ;;  %2485 = vset.pattern.permute.xlu1 %v2806_v1  ;;  %v2437_v2 = vld [vmem:[%s3702_s1 + $0x10] sm:$0xff]   ;;  %2474 = vset.pattern.permute.xlu0 %v2806_v1  ;;  %v2436_v11 = vld [vmem:[%s3702_s1 + $0x8] sm:$0xff]   ;;  %vm1471_vm2 = vcmask 1045504   ;;  %v2808_v45 = vmov 65535   ;;  %vm1379_vm3 = vcmask 482304  }
   0x2   :  { %v2285_v3 = vld [vmem:[%s3701_s0] sm:$0xff]  ;;  %v2330_v4 = vunpack.c.l.bf16 %v2437_v2  ;;  %v2331_v5 = vunpack.c.h.bf16 %v2437_v2  ;;  %2497 = vset.pattern.permute.xlu2 %v2807_v7  ;;  %339 = vmatpush.bf16.msra.mxu0 %v2314_v0  ;;  %v2326_v13 = vunpack.c.l.bf16 %v2436_v11  ;;  %v2327_v14 = vunpack.c.h.bf16 %v2436_v11  ;;  %v2286_v16 = vld [vmem:[%s3701_s0 + $0x8] sm:$0xff]  ;;  %v2438_v17 = vld [vmem:[%s3702_s1 + $0x18] sm:$0xff]  }
   0x3   :  { %v2321_v6 = vld [vmem:[%s3702_s1] sm:$0xff]   ;;  %2464 = vmatpush.bf16.msra.mxu3 %v2314_v0  ;;  %v2334_v18 = vunpack.c.l.bf16 %v2438_v17  ;;  %v2335_v19 = vunpack.c.h.bf16 %v2438_v17  ;;  %v2287_v21 = vld [vmem:[%s3701_s0 + $0x10] sm:$0xff]  ;;  %v2288_v26 = vld [vmem:[%s3701_s0 + $0x18] sm:$0xff]  ;;  %v1472_v46 = vsel %vm1470_vm1, 4294967295, %v2808_v45  ;;  %vm1829_vm4 = vcmask 1040384  }
   0x4   :  { %v2322_v8 = vunpack.c.l.bf16 %v2321_v6  ;;  %v2323_v9 = vunpack.c.h.bf16 %v2321_v6  ;;  %v2486_v10 = vpack.i.bf16 %v2331_v5, %v2330_v4  ;;  %v2480_v15 = vpack.i.bf16 %v2327_v14, %v2326_v13  ;;  %v2439_v22 = vld [vmem:[%s3702_s1 + $0x20] sm:$0xff]   ;;  %v2440_v27 = vld [vmem:[%s3702_s1 + $0x28] sm:$0xff]   ;;  %v2441_v32 = vld [vmem:[%s3702_s1 + $0x30] sm:$0xff]  }
   0x5   :  { %2175 = vmatmul.msk.bf16.vlgmr.msra.gmra.mxu0 %vm241_vm0, %v2285_v3  ;;  %v2515_v20 = vpack.i.bf16 %v2335_v19, %v2334_v18  ;;  %v2338_v23 = vunpack.c.l.bf16 %v2439_v22  ;;  %v2339_v24 = vunpack.c.h.bf16 %v2439_v22  ;;  %v2342_v28 = vunpack.c.l.bf16 %v2440_v27  ;;  %v2289_v31 = vld [vmem:[%s3701_s0 + $0x20] sm:$0xff]  ;;  %v2290_v36 = vld [vmem:[%s3701_s0 + $0x28] sm:$0xff]  ;;  %v2442_v37 = vld [vmem:[%s3702_s1 + $0x38] sm:$0xff]  }
   0x6   :  { %v2475_v12 = vpack.i.bf16 %v2323_v9, %v2322_v8  ;;  %2487 = vperm.xlu1 %2485, %v2486_v10   ;;  %2499 = vperm.xlu2 %2497, %v2480_v15   ;;  %v2343_v29 = vunpack.c.h.bf16 %v2440_v27  ;;  %v2346_v33 = vunpack.c.l.bf16 %v2441_v32  ;;  %v2347_v34 = vunpack.c.h.bf16 %v2441_v32  ;;  %v2291_v41 = vld [vmem:[%s3701_s0 + $0x30] sm:$0xff]  ;;  %v2219_v42 = vld [vmem:[%s3704_s3 + $0x18] sm:$0xf]  ;;  %v2318_v43 = vld [vmem:[%s3704_s3 + $0x18] sm:$0x30] }
   0x7   :  { %v2525_v25 = vpack.i.bf16 %v2339_v24, %v2338_v23  ;;  %v2350_v38 = vunpack.c.l.bf16 %v2442_v37  ;;  %v2351_v39 = vunpack.c.h.bf16 %v2442_v37  ;;  %v2220_v44 = vor.u32 %v2318_v43, %v2219_v42  ;;  %v2317_v49 = vld [vmem:[%s3704_s3 + $0x10] sm:$0xff]  ;;  %v2316_v50 = vld [vmem:[%s3704_s3 + $0x8] sm:$0xff]  ;;  %v2443_v51 = vld [vmem:[%s3702_s1 + $0x40] sm:$0xff]  }
   0x8   :  { %2476 = vperm.xlu0 %2474, %v2475_v12   ;;  %v2535_v30 = vpack.i.bf16 %v2343_v29, %v2342_v28  ;;  %v2541_v35 = vpack.i.bf16 %v2347_v34, %v2346_v33  ;;  %v1473_v47 = vsel %vm1471_vm2, %v1472_v46, 0  ;;  %v2354_v52 = vunpack.c.l.bf16 %v2443_v51  ;;  %v2315_v54 = vld [vmem:[%s3704_s3] sm:$0xff]  ;;  %v2292_v56 = vld [vmem:[%s3701_s0 + $0x38] sm:$0xff]  ;;  %v2444_v58 = vld [vmem:[%s3702_s1 + $0x48] sm:$0xff]  }
   0x9   :  { %v2553_v40 = vpack.i.bf16 %v2351_v39, %v2350_v38  ;;  %v1475_v48 = vand.u32 %v2220_v44, %v1473_v47  ;;  %v2355_v53 = vunpack.c.h.bf16 %v2443_v51  ;;  %v2358_v59 = vunpack.c.l.bf16 %v2444_v58  ;;  %v2942_v62 = vld [vmem:[%s3703_s5] ss:$0 sm:$0xff]  ;;  %v2445_v13 = vld [vmem:[%s3702_s1 + $0x50] sm:$0xff]  }
   0xa   :  { %v2359_v60 = vunpack.c.h.bf16 %v2444_v58  ;;  %v2293_v63 = vld [vmem:[%s3701_s0 + $0x40] sm:$0xff]  ;;  %v2362_v14 = vunpack.c.l.bf16 %v2445_v13  ;;  %v2295_v43 = vld [vmem:[%s3701_s0 + $0x50] sm:$0xff]  ;;  %vm1738_vm5 = vcmask 146432   ;;  %vm1991_vm6 = vcmask 80896  }
   0xb   :  { %1481 = vmatpush.bf16.msra.mxu1 %v1475_v48  ;;  %2465 = vmatpush.bf16.msrb.mxu3 %v1475_v48  ;;  %v2570_v55 = vpack.i.bf16 %v2355_v53, %v2354_v52 }
   0xc   :  { %v2581_v61 = vpack.i.bf16 %v2359_v60, %v2358_v59 }
   0xe   :  { %2491 = vset.pattern.permute.xlu1 %v2807_v7  ;;  %2503 = vset.pattern.permute.xlu2 %v2806_v1 }
   0xf   :  { %2493 = vperm.xlu1 %2491, %v2475_v12   ;;  %2505 = vperm.xlu2 %2503, %v2515_v20  }
  0x10   :  { %2481 = vperm.xlu0 %2474, %v2480_v15   ;;  %1482 = vmatpush.bf16.msra.mxu1 %v2317_v49  ;;  %v2363_v15 = vunpack.c.h.bf16 %v2445_v13 }
  0x11   :  { %2466 = vmatpush.bf16.msrb.mxu3 %v2317_v49 }
  0x12   :  { %v2587_v18 = vpack.i.bf16 %v2363_v15, %v2362_v14 }
  0x14   :  { %1483 = vmatpush.bf16.msra.mxu1 %v2316_v50 }
  0x15   :  { %2176 = vmatmul.msk.bf16.gmra.mxu0 %vm241_vm0, %v2286_v16  ;;  %2467 = vmatpush.bf16.msrb.mxu3 %v2316_v50 }
  0x17   :  { %2516 = vperm.xlu1 %2491, %v2515_v20   ;;  %2521 = vperm.xlu2 %2503, %v2525_v25  }
  0x18   :  { %2509 = vset.pattern.permute.xlu0 %v2807_v7  ;;  %1484 = vmatpush.bf16.msra.mxu1 %v2315_v54 }
  0x19   :  { %2511 = vperm.xlu0 %2509, %v2486_v10   ;;  %2468 = vmatpush.bf16.msrb.mxu3 %v2315_v54 }
  0x1f   :  { %2526 = vperm.xlu1 %2491, %v2525_v25   ;;  %2531 = vperm.xlu2 %2503, %v2535_v30  }
  0x21   :  { %2536 = vperm.xlu0 %2509, %v2535_v30  }
  0x25   :  { %2177 = vmatmul.msk.bf16.gmra.mxu0 %vm241_vm0, %v2287_v21  ;;  %v2294_v21 = vld [vmem:[%s3701_s0 + $0x48] sm:$0xff] }
  0x27   :  { %2540 = vset.pattern.permute.xlu1 %v2806_v1  ;;  %2546 = vset.pattern.permute.xlu2 %v2807_v7 }
  0x28   :  { %2542 = vperm.xlu1 %2540, %v2541_v35   ;;  %2548 = vperm.xlu2 %2546, %v2541_v35   ;;  %v2446_v35 = vld [vmem:[%s3702_s1 + $0x58] sm:$0xff]  }
  0x29   :  { %2552 = vset.pattern.permute.xlu0 %v2806_v1  ;;  %v2367_v37 = vunpack.c.h.bf16 %v2446_v35 }
  0x2a   :  { %2554 = vperm.xlu0 %2552, %v2553_v40  }
  0x30   :  { %2558 = vset.pattern.permute.xlu1 %v2807_v7  ;;  %2564 = vset.pattern.permute.xlu2 %v2806_v1 }
  0x31   :  { %2560 = vperm.xlu1 %2558, %v2553_v40   ;;  %2566 = vperm.xlu2 %2564, %v2570_v55  }
  0x32   :  { %2580 = vset.pattern.permute.xlu0 %v2807_v7 }
  0x33   :  { %2582 = vperm.xlu0 %2580, %v2581_v61  }
  0x35   :  { %2178 = vmatmul.msk.bf16.gmra.mxu0 %vm241_vm0, %v2288_v26 }
  0x39   :  { %2571 = vperm.xlu1 %2558, %v2570_v55   ;;  %2576 = vperm.xlu2 %2564, %v2581_v61  }
  0x3b   :  { %2608 = vset.pattern.permute.xlu0 %v2806_v1 }
  0x41   :  { %2586 = vset.pattern.permute.xlu1 %v2806_v1  ;;  %2592 = vset.pattern.permute.xlu2 %v2807_v7 }
  0x42   :  { %2588 = vperm.xlu1 %2586, %v2587_v18   ;;  %2594 = vperm.xlu2 %2592, %v2587_v18  }
  0x45   :  { %2179 = vmatmul.msk.bf16.gmra.mxu0 %vm241_vm0, %v2289_v31 }
  0x55   :  { %2180 = vmatmul.msk.bf16.gmra.mxu0 %vm241_vm0, %v2290_v36  ;;  %v2366_v36 = vunpack.c.l.bf16 %v2446_v35 }
  0x57   :  { %v2598_v40 = vpack.i.bf16 %v2367_v37, %v2366_v36 }
  0x59   :  { %2599 = vperm.xlu1 %2586, %v2598_v40   ;;  %2604 = vperm.xlu2 %2592, %v2598_v40  }
  0x60   :  { %v2500_v28 = vpop.permute.xlu2 %2499 }
  0x61   :  { %v2501_v31 = vunpack.i.l.bf16 %v2500_v28  ;;  %v2502_v33 = vunpack.i.h.bf16 %v2500_v28  ;;  %2614 = vset.pattern.permute.xlu1 %v2807_v7  ;;  %2620 = vset.pattern.permute.xlu2 %v2806_v1 }
  0x65   :  { %2181 = vmatmul.msk.bf16.gmra.mxu0 %vm241_vm0, %v2291_v41 }
  0x75   :  { %2182 = vmatmul.msk.bf16.gmra.mxu0 %vm241_vm0, %v2292_v56  ;;  %v2447_v56 = vld [vmem:[%s3702_s1 + $0x60] sm:$0xff]  }
  0x76   :  { %v2370_v58 = vunpack.c.l.bf16 %v2447_v56  ;;  %v2371_v59 = vunpack.c.h.bf16 %v2447_v56 }
  0x78   :  { %v2934_v57 = vpop.permute.xlu1 %2487 }
  0x79   :  { %v2489_v47 = vunpack.i.l.bf16 %v2934_v57  ;;  %v2490_v50 = vunpack.i.h.bf16 %v2934_v57  ;;  %v2296_v57 = vld [vmem:[%s3701_s0 + $0x58] sm:$0xff] }
  0x7a   :  { %v2477_v0 = vpop.permute.xlu0 %2476 }
  0x7b   :  { %v2478_v3 = vunpack.i.l.bf16 %v2477_v0  ;;  %v2479_v6 = vunpack.i.h.bf16 %v2477_v0 }
  0x81   :  { %v2494_v5 = vpop.permute.xlu1 %2493 }
  0x82   :  { %v341_v2 = vpop.f32.mrf.mxu0  ;;  %v2495_v9 = vunpack.i.l.bf16 %v2494_v5  ;;  %v2496_v11 = vunpack.i.h.bf16 %v2494_v5  ;;  %v2482_v23 = vpop.permute.xlu0 %2481 }
  0x83   :  { %v342_v4 = vadd.f32 %v2942_v62, %v341_v2  ;;  %v2483_v26 = vunpack.i.l.bf16 %v2482_v23  ;;  %v2484_v29 = vunpack.i.h.bf16 %v2482_v23 }
  0x85   :  { %2183 = vmatmul.msk.bf16.gmra.mxu0 %vm241_vm0, %v2293_v63  ;;  %v903_v8 = vmul.f32 %v2478_v3, %v342_v4  ;;  %v2609_v63 = vpack.i.bf16 %v2371_v59, %v2370_v58  ;;  %v2506_v4 = vpop.permute.xlu2 %2505 }
  0x87   :  { %v1198_v16 = vadd.f32 %v2495_v9, %v903_v8  ;;  %2610 = vperm.xlu0 %2608, %v2609_v63   ;;  %2616 = vperm.xlu1 %2614, %v2609_v63   ;;  %v2507_v8 = vunpack.i.l.bf16 %v2506_v4 }
  0x89   :  { %v1257_v20 = vmax.f32 %v1198_v16, 0.0 }
  0x8a   :  { %v343_v10 = vpop.f32.mrf.mxu0 }
  0x8b   :  { %v344_v12 = vadd.f32 %v2942_v62, %v343_v10  ;;  %v2512_v49 = vpop.permute.xlu0 %2511  ;;  %v2517_v10 = vpop.permute.xlu1 %2516 }
  0x8c   :  { %v2513_v52 = vunpack.i.l.bf16 %v2512_v49  ;;  %v2514_v54 = vunpack.i.h.bf16 %v2512_v49  ;;  %v2518_v13 = vunpack.i.l.bf16 %v2517_v10  ;;  %v2519_v15 = vunpack.i.h.bf16 %v2517_v10 }
  0x8d   :  { %v904_v17 = vmul.f32 %v2479_v6, %v344_v12 }
  0x8f   :  { %v1199_v19 = vadd.f32 %v2496_v11, %v904_v17  ;;  %2636 = vset.pattern.permute.xlu0 %v2807_v7  ;;  %v2508_v11 = vunpack.i.h.bf16 %v2506_v4 }
  0x91   :  { %v1258_v22 = vmax.f32 %v1199_v19, 0.0  ;;  %v2448_v19 = vld [vmem:[%s3702_s1 + $0x68] sm:$0xff]  }
  0x92   :  { %v346_v24 = vpop.f32.mrf.mxu0 }
  0x93   :  { %v1316_v25 = vpack.c.bf16 %v1258_v22, %v1257_v20  ;;  %v347_v27 = vadd.f32 %v2942_v62, %v346_v24  ;;  %v2374_v20 = vunpack.c.l.bf16 %v2448_v19  ;;  %v2537_v58 = vpop.permute.xlu0 %2536 }
  0x94   :  { %v2538_v63 = vunpack.i.l.bf16 %v2537_v58 }
  0x95   :  { %2184 = vmatmul.msk.bf16.gmra.mxu0 %vm241_vm0, %v2294_v21  ;;  %2221 = vmatmul.msk.bf16.vlgmr.msra.gmra.mxu1 %vm1379_vm3, %v1316_v25  ;;  %v905_v30 = vmul.f32 %v2483_v26, %v347_v27  ;;  %v2375_v21 = vunpack.c.h.bf16 %v2448_v19  ;;  %v2297_v25 = vld [vmem:[%s3701_s0 + $0x60] sm:$0xff]  ;;  %v2522_v27 = vpop.permute.xlu2 %2521  ;;  %v2458_v19 = vld [vmem:[%s3702_s1 + $0xb8] sm:$0xff]  }
  0x97   :  { %v1200_v38 = vadd.f32 %v2501_v31, %v905_v30  ;;  %v2626_v23 = vpack.i.bf16 %v2375_v21, %v2374_v20  ;;  %v2523_v30 = vunpack.i.l.bf16 %v2522_v27  ;;  %v2414_v21 = vunpack.c.l.bf16 %v2458_v19 }
  0x99   :  { %v1259_v42 = vmax.f32 %v1200_v38, 0.0  ;;  %2627 = vperm.xlu1 %2614, %v2626_v23   ;;  %2622 = vperm.xlu2 %2620, %v2626_v23  }
  0x9a   :  { %v348_v32 = vpop.f32.mrf.mxu0 }
  0x9b   :  { %v349_v34 = vadd.f32 %v2942_v62, %v348_v32  ;;  %v2527_v32 = vpop.permute.xlu1 %2526 }
  0x9c   :  { %v2528_v35 = vunpack.i.l.bf16 %v2527_v32  ;;  %v2529_v37 = vunpack.i.h.bf16 %v2527_v32  ;;  %v2451_v32 = vld [vmem:[%s3702_s1 + $0x80] sm:$0xff]  }
  0x9d   :  { %v906_v39 = vmul.f32 %v2484_v29, %v349_v34  ;;  %v2532_v49 = vpop.permute.xlu2 %2531 }
  0x9f   :  { %v1201_v41 = vadd.f32 %v2502_v33, %v906_v39  ;;  %v2524_v33 = vunpack.i.h.bf16 %v2522_v27 }
  0xa1   :  { %v1260_v44 = vmax.f32 %v1201_v41, 0.0  ;;  %2642 = vset.pattern.permute.xlu1 %v2806_v1  ;;  %v2449_v41 = vld [vmem:[%s3702_s1 + $0x70] sm:$0xff]  }
  0xa2   :  { %v351_v45 = vpop.f32.mrf.mxu0 }
  0xa3   :  { %v1317_v46 = vpack.c.bf16 %v1260_v44, %v1259_v42  ;;  %v352_v48 = vadd.f32 %v2942_v62, %v351_v45  ;;  %v2378_v42 = vunpack.c.l.bf16 %v2449_v41 }
  0xa5   :  { %2185 = vmatmul.msk.bf16.gmra.mxu0 %vm241_vm0, %v2295_v43  ;;  %2222 = vmatmul.msk.bf16.gmra.mxu1 %vm1379_vm3, %v1317_v46  ;;  %v907_v51 = vmul.f32 %v2489_v47, %v352_v48  ;;  %v2379_v43 = vunpack.c.h.bf16 %v2449_v41  ;;  %v2298_v47 = vld [vmem:[%s3701_s0 + $0x68] sm:$0xff]  ;;  %v2549_v20 = vpop.permute.xlu2 %2548 }
  0xa7   :  { %v1202_v60 = vadd.f32 %v2513_v52, %v907_v51  ;;  %v2637_v45 = vpack.i.bf16 %v2379_v43, %v2378_v42  ;;  %v2457_v52 = vld [vmem:[%s3702_s1 + $0xb0] sm:$0xff]   ;;  %v1726_v43 = vld [vmem:[%s3705_s4 + $0x8] sm:$0x1] }
  0xa9   :  { %v1261_v2 = vmax.f32 %v1202_v60, 0.0  ;;  %2638 = vperm.xlu0 %2636, %v2637_v45   ;;  %v2534_v60 = vunpack.i.h.bf16 %v2532_v49  ;;  %2632 = vperm.xlu2 %2620, %v2637_v45  }
  0xaa   :  { %v353_v53 = vpop.f32.mrf.mxu0 }
  0xab   :  { %v354_v55 = vadd.f32 %v2942_v62, %v353_v53  ;;  %v2410_v53 = vunpack.c.l.bf16 %v2457_v52 }
  0xad   :  { %v908_v61 = vmul.f32 %v2490_v50, %v354_v55  ;;  %v2533_v55 = vunpack.i.l.bf16 %v2532_v49 }
  0xaf   :  { %v1203_v0 = vadd.f32 %v2514_v54, %v908_v61  ;;  %v2411_v54 = vunpack.c.h.bf16 %v2457_v52 }
  0xb1   :  { %v1262_v3 = vmax.f32 %v1203_v0, 0.0  ;;  %v2643_v59 = vpack.i.bf16 %v2411_v54, %v2410_v53  ;;  %2664 = vset.pattern.permute.xlu0 %v2806_v1  ;;  %2648 = vset.pattern.permute.xlu2 %v2807_v7 }
  0xb2   :  { %v356_v5 = vpop.f32.mrf.mxu0 }
  0xb3   :  { %v1318_v6 = vpack.c.bf16 %v1262_v3, %v1261_v2  ;;  %v357_v9 = vadd.f32 %v2942_v62, %v356_v5  ;;  %2644 = vperm.xlu1 %2642, %v2643_v59   ;;  %v2539_v2 = vunpack.i.h.bf16 %v2537_v58  ;;  %v2450_v3 = vld [vmem:[%s3702_s1 + $0x78] sm:$0xff]   ;;  %2650 = vperm.xlu2 %2648, %v2643_v59   ;;  %v3050_v58 = vld [vmem:[%s3705_s4] sm:$0xff] }
  0xb4   :  { %v2382_v4 = vunpack.c.l.bf16 %v2450_v3  ;;  %v2383_v5 = vunpack.c.h.bf16 %v2450_v3  ;;  %v2301_v3 = vld [vmem:[%s3701_s0 + $0x80] sm:$0xff] }
  0xb5   :  { %2186 = vmatmul.msk.bf16.gmra.mxu0 %vm241_vm0, %v2296_v57  ;;  %2223 = vmatmul.msk.bf16.gmra.mxu1 %vm1379_vm3, %v1318_v6  ;;  %v909_v12 = vmul.f32 %v2507_v8, %v357_v9 }
  0xb6   :  { %v2654_v9 = vpack.i.bf16 %v2383_v5, %v2382_v4  ;;  %v2567_v5 = vpop.permute.xlu2 %2566 }
  0xb7   :  { %v1204_v17 = vadd.f32 %v2518_v13, %v909_v12  ;;  %v2299_v12 = vld [vmem:[%s3701_s0 + $0x70] sm:$0xff] }
  0xb9   :  { %v1263_v24 = vmax.f32 %v1204_v17, 0.0 }
  0xba   :  { %v358_v14 = vpop.f32.mrf.mxu0 }
  0xbb   :  { %v359_v16 = vadd.f32 %v2942_v62, %v358_v14  ;;  %2655 = vperm.xlu1 %2642, %v2654_v9   ;;  %v2543_v14 = vpop.permute.xlu1 %2542  ;;  %2660 = vperm.xlu2 %2648, %v2654_v9  }
  0xbc   :  { %v2544_v17 = vunpack.i.l.bf16 %v2543_v14 }
  0xbd   :  { %v910_v18 = vmul.f32 %v2508_v11, %v359_v16 }
  0xbf   :  { %v1205_v22 = vadd.f32 %v2519_v15, %v910_v18 }
  0xc1   :  { %v1264_v26 = vmax.f32 %v1205_v22, 0.0  ;;  %v2415_v22 = vunpack.c.h.bf16 %v2458_v19 }
  0xc2   :  { %v361_v28 = vpop.f32.mrf.mxu0 }
  0xc3   :  { %v1319_v29 = vpack.c.bf16 %v1264_v26, %v1263_v24  ;;  %v362_v31 = vadd.f32 %v2942_v62, %v361_v28  ;;  %2670 = vset.pattern.permute.xlu1 %v2807_v7  ;;  %v2671_v23 = vpack.i.bf16 %v2415_v22, %v2414_v21  ;;  %v2545_v24 = vunpack.i.h.bf16 %v2543_v14  ;;  %2676 = vset.pattern.permute.xlu2 %v2806_v1 }
  0xc4   :  { %v2550_v26 = vunpack.i.l.bf16 %v2549_v20  ;;  %v2551_v28 = vunpack.i.h.bf16 %v2549_v20  ;;  %v2569_v20 = vunpack.i.h.bf16 %v2567_v5 }
  0xc5   :  { %2187 = vmatmul.msk.bf16.gmra.mxu0 %vm241_vm0, %v2297_v25  ;;  %2224 = vmatmul.msk.bf16.gmra.mxu1 %vm1379_vm3, %v1319_v29  ;;  %v911_v34 = vmul.f32 %v2523_v30, %v362_v31 }
  0xc6   :  { %2672 = vperm.xlu1 %2670, %v2671_v23   ;;  %2666 = vperm.xlu0 %2664, %v2671_v23  }
  0xc7   :  { %v1206_v39 = vadd.f32 %v2528_v35, %v911_v34  ;;  %v2387_v34 = vunpack.c.h.bf16 %v2451_v32 }
  0xc9   :  { %v1265_v46 = vmax.f32 %v1206_v39, 0.0 }
  0xca   :  { %v363_v36 = vpop.f32.mrf.mxu0 }
  0xcb   :  { %v364_v38 = vadd.f32 %v2942_v62, %v363_v36 }
  0xcd   :  { %v912_v40 = vmul.f32 %v2524_v33, %v364_v38  ;;  %v2386_v33 = vunpack.c.l.bf16 %v2451_v32  ;;  %v2300_v38 = vld [vmem:[%s3701_s0 + $0x78] sm:$0xff] }
  0xce   :  { %2692 = vset.pattern.permute.xlu0 %v2807_v7 }
  0xcf   :  { %v1207_v44 = vadd.f32 %v2529_v37, %v912_v40  ;;  %v2682_v36 = vpack.i.bf16 %v2387_v34, %v2386_v33  ;;  %v2555_v40 = vpop.permute.xlu0 %2554  ;;  %v2577_v34 = vpop.permute.xlu2 %2576 }
  0xd0   :  { %v2557_v49 = vunpack.i.h.bf16 %v2555_v40 }
  0xd1   :  { %v1266_v48 = vmax.f32 %v1207_v44, 0.0  ;;  %2683 = vperm.xlu1 %2670, %v2682_v36   ;;  %v2556_v44 = vunpack.i.l.bf16 %v2555_v40  ;;  %2678 = vperm.xlu2 %2676, %v2682_v36   ;;  %v3085_v40 = vld [vmem:[%s3703_s5 + $0x1] ss:$0 sm:$0xff] }
  0xd2   :  { %v366_v50 = vpop.f32.mrf.mxu0 }
  0xd3   :  { %v1320_v51 = vpack.c.bf16 %v1266_v48, %v1265_v46  ;;  %v367_v56 = vadd.f32 %v2942_v62, %v366_v50  ;;  %v1734_v46 = vunpack.c.l.b16 %v1726_v43 }
  0xd5   :  { %2188 = vmatmul.msk.bf16.gmra.mxu0 %vm241_vm0, %v2298_v47  ;;  %2225 = vmatmul.msk.bf16.gmra.mxu1 %vm1379_vm3, %v1320_v51  ;;  %v913_v61 = vmul.f32 %v2533_v55, %v367_v56  ;;  %v2561_v47 = vpop.permute.xlu1 %2560  ;;  %v1736_v48 = vpack.c.b16 %v1734_v46, %v1734_v46  ;;  %v2452_v56 = vld [vmem:[%s3702_s1 + $0x88] sm:$0xff]  }
  0xd6   :  { %v2562_v51 = vunpack.i.l.bf16 %v2561_v47  ;;  %v2563_v54 = vunpack.i.h.bf16 %v2561_v47  ;;  %v2390_v59 = vunpack.c.l.bf16 %v2452_v56 }
  0xd7   :  { %v1208_v6 = vadd.f32 %v2538_v63, %v913_v61  ;;  %v3039_v52 = vsel %vm1829_vm4, %v1736_v48, 0  ;;  %v2583_v43 = vpop.permute.xlu0 %2582 }
  0xd8   :  { %1839 = vmatpush.bf16.msra.mxu2 %v3039_v52  ;;  %v2584_v47 = vunpack.i.l.bf16 %v2583_v43  ;;  %v2585_v48 = vunpack.i.h.bf16 %v2583_v43 }
  0xd9   :  { %v1267_v11 = vmax.f32 %v1208_v6, 0.0  ;;  %2698 = vset.pattern.permute.xlu1 %v2806_v1 }
  0xda   :  { %v368_v0 = vpop.f32.mrf.mxu0 }
  0xdb   :  { %v369_v57 = vadd.f32 %v2942_v62, %v368_v0 }
  0xdc   :  { %1840 = vmatpush.bf16.msra.mxu2 %v3050_v58 }
  0xdd   :  { %v914_v8 = vmul.f32 %v2534_v60, %v369_v57  ;;  %v2391_v60 = vunpack.c.h.bf16 %v2452_v56 }
  0xdf   :  { %v1209_v10 = vadd.f32 %v2539_v2, %v914_v8  ;;  %v3053_v0 = vpack.i.bf16 %v2391_v60, %v2390_v59  ;;  %v2459_v8 = vld [vmem:[%s3702_s1 + $0xc0] sm:$0xff]  }
  0xe1   :  { %v1268_v13 = vmax.f32 %v1209_v10, 0.0  ;;  %2700 = vperm.xlu1 %2698, %v3053_v0   ;;  %v2418_v10 = vunpack.c.l.bf16 %v2459_v8 }
  0xe2   :  { %v371_v15 = vpop.f32.mrf.mxu0 }
  0xe3   :  { %v1321_v16 = vpack.c.bf16 %v1268_v13, %v1267_v11  ;;  %v372_v18 = vadd.f32 %v2942_v62, %v371_v15  ;;  %v2419_v11 = vunpack.c.h.bf16 %v2459_v8  ;;  %v2568_v13 = vunpack.i.l.bf16 %v2567_v5 }
  0xe5   :  { %2189 = vmatmul.msk.bf16.gmra.mxu0 %vm241_vm0, %v2299_v12  ;;  %2226 = vmatmul.msk.bf16.gmra.mxu1 %vm1379_vm3, %v1321_v16  ;;  %v915_v25 = vmul.f32 %v2544_v17, %v372_v18  ;;  %v2460_v12 = vld [vmem:[%s3702_s1 + $0xc8] sm:$0xff]   ;;  %v2572_v16 = vpop.permute.xlu1 %2571  ;;  %v2693_v17 = vpack.i.bf16 %v2419_v11, %v2418_v10  ;;  %v2303_v10 = vld [vmem:[%s3701_s0 + $0x90] sm:$0xff] }
  0xe6   :  { %v2422_v15 = vunpack.c.l.bf16 %v2460_v12  ;;  %v2423_v18 = vunpack.c.h.bf16 %v2460_v12  ;;  %v2573_v22 = vunpack.i.l.bf16 %v2572_v16 }
  0xe7   :  { %v1210_v30 = vadd.f32 %v2550_v26, %v915_v25  ;;  %2694 = vperm.xlu0 %2692, %v2693_v17   ;;  %v2453_v26 = vld [vmem:[%s3702_s1 + $0x90] sm:$0xff]   ;;  %2688 = vperm.xlu2 %2676, %v2693_v17  }
  0xe8   :  { %v3070_v19 = vpack.i.bf16 %v2423_v18, %v2422_v15  ;;  %v2462_v15 = vld [vmem:[%s3702_s1 + $0xd8] sm:$0xff]  }
  0xe9   :  { %v1269_v37 = vmax.f32 %v1210_v30, 0.0  ;;  %v2431_v17 = vunpack.c.h.bf16 %v2462_v15 }
  0xea   :  { %v373_v27 = vpop.f32.mrf.mxu0  ;;  %2711 = vperm.xlu1 %2698, %v3070_v19  }
  0xeb   :  { %v374_v29 = vadd.f32 %v2942_v62, %v373_v27  ;;  %v2394_v27 = vunpack.c.l.bf16 %v2453_v26 }
  0xed   :  { %v916_v31 = vmul.f32 %v2545_v24, %v374_v29  ;;  %v2574_v24 = vunpack.i.h.bf16 %v2572_v16  ;;  %v2430_v16 = vunpack.c.l.bf16 %v2462_v15 }
  0xef   :  { %v1211_v35 = vadd.f32 %v2551_v28, %v916_v31  ;;  %v2395_v28 = vunpack.c.h.bf16 %v2453_v26  ;;  %2720 = vset.pattern.permute.xlu0 %v2806_v1  ;;  %2704 = vset.pattern.permute.xlu2 %v2807_v7 }
  0xf0   :  { %2706 = vperm.xlu2 %2704, %v3053_v0  }
  0xf1   :  { %v1270_v39 = vmax.f32 %v1211_v35, 0.0  ;;  %v2721_v31 = vpack.i.bf16 %v2395_v28, %v2394_v27  ;;  %v2302_v35 = vld [vmem:[%s3701_s0 + $0x88] sm:$0xff] }
  0xf2   :  { %v376_v41 = vpop.f32.mrf.mxu0  ;;  %2726 = vset.pattern.permute.xlu1 %v2807_v7 }
  0xf3   :  { %v1322_v42 = vpack.c.bf16 %v1270_v39, %v1269_v37  ;;  %v377_v45 = vadd.f32 %v2942_v62, %v376_v41  ;;  %2722 = vperm.xlu0 %2720, %v2721_v31   ;;  %2728 = vperm.xlu1 %2726, %v2721_v31   ;;  %v2578_v41 = vunpack.i.l.bf16 %v2577_v34 }
  0xf5   :  { %2190 = vmatmul.msk.bf16.gmra.mxu0 %vm241_vm0, %v2300_v38  ;;  %2227 = vmatmul.msk.bf16.gmra.mxu1 %vm1379_vm3, %v1322_v42  ;;  %v917_v50 = vmul.f32 %v2556_v44, %v377_v45  ;;  %v2579_v45 = vunpack.i.h.bf16 %v2577_v34 }
  0xf7   :  { %v1212_v61 = vadd.f32 %v2562_v51, %v917_v50  ;;  %v2461_v51 = vld [vmem:[%s3702_s1 + $0xd0] sm:$0xff]  }
  0xf8   :  { %v2427_v56 = vunpack.c.h.bf16 %v2461_v51  ;;  %2716 = vperm.xlu2 %2704, %v3070_v19   ;;  %v2455_v19 = vld [vmem:[%s3702_s1 + $0xa0] sm:$0xff]  }
  0xf9   :  { %v1271_v57 = vmax.f32 %v1212_v61, 0.0 }
  0xfa   :  { %v378_v53 = vpop.f32.mrf.mxu0 }
  0xfb   :  { %v379_v55 = vadd.f32 %v2942_v62, %v378_v53  ;;  %2748 = vset.pattern.permute.xlu0 %v2807_v7 }
  0xfd   :  { %v918_v63 = vmul.f32 %v2557_v49, %v379_v55  ;;  %v2426_v55 = vunpack.c.l.bf16 %v2461_v51  ;;  %v2463_v51 = vld [vmem:[%s3702_s1 + $0xe0] sm:$0xff]  }
  0xff   :  { %v1213_v2 = vadd.f32 %v2563_v54, %v918_v63 }
 0x100   :  { %2732 = vset.pattern.permute.xlu2 %v2806_v1 }
 0x101   :  { %v1272_v4 = vmax.f32 %v1213_v2, 0.0  ;;  %v2738_v2 = vpack.i.bf16 %v2427_v56, %v2426_v55  ;;  %v2435_v55 = vunpack.c.h.bf16 %v2463_v51 }
 0x102   :  { %v381_v6 = vpop.f32.mrf.mxu0 }
 0x103   :  { %v1323_v9 = vpack.c.bf16 %v1272_v4, %v1271_v57  ;;  %v382_v14 = vadd.f32 %v2942_v62, %v381_v6  ;;  %v2454_v57 = vld [vmem:[%s3702_s1 + $0x98] sm:$0xff]   ;;  %2739 = vperm.xlu1 %2726, %v2738_v2   ;;  %2734 = vperm.xlu2 %2732, %v2738_v2  }
 0x104   :  { %v2398_v0 = vunpack.c.l.bf16 %v2454_v57 }
 0x105   :  { %2191 = vmatmul.msk.bf16.gmra.mxu0 %vm241_vm0, %v2301_v3  ;;  %2228 = vmatmul.msk.bf16.gmra.mxu1 %vm1379_vm3, %v1323_v9  ;;  %v919_v21 = vmul.f32 %v2568_v13, %v382_v14  ;;  %v2399_v3 = vunpack.c.h.bf16 %v2454_v57  ;;  %v2589_v9 = vpop.permute.xlu1 %2588 }
 0x106   :  { %v2590_v18 = vunpack.i.l.bf16 %v2589_v9 }
 0x107   :  { %v1214_v29 = vadd.f32 %v2573_v22, %v919_v21  ;;  %v3102_v6 = vpack.i.bf16 %v2399_v3, %v2398_v0  ;;  %v2595_v21 = vpop.permute.xlu2 %2594  ;;  %v3115_v22 = vpack.i.bf16 %v2431_v17, %v2430_v16  ;;  %v2308_v16 = vld [vmem:[%s3701_s0 + $0xb8] sm:$0xff] }
 0x108   :  { %v2596_v26 = vunpack.i.l.bf16 %v2595_v21  ;;  %2198 = vmatmul.msk.bf16.vlgmr.msra.gmra.mxu3 %vm241_vm0, %v2308_v16 }
 0x109   :  { %v1273_v33 = vmax.f32 %v1214_v29, 0.0  ;;  %2750 = vperm.xlu0 %2748, %v3102_v6   ;;  %v2597_v29 = vunpack.i.h.bf16 %v2595_v21  ;;  %v2305_v21 = vld [vmem:[%s3701_s0 + $0xa0] sm:$0xff]  ;;  %2469 = vmatpush.bf16.msra.mxu3 %v3039_v52 }
 0x10a   :  { %v383_v23 = vpop.f32.mrf.mxu0 }
 0x10b   :  { %v384_v25 = vadd.f32 %v2942_v62, %v383_v23  ;;  %2754 = vset.pattern.permute.xlu1 %v2806_v1  ;;  %v2591_v23 = vunpack.i.h.bf16 %v2589_v9  ;;  %2744 = vperm.xlu2 %2732, %v3102_v6  }
 0x10c   :  { %2756 = vperm.xlu1 %2754, %v3115_v22  }
 0x10d   :  { %v920_v30 = vmul.f32 %v2569_v20, %v384_v25  ;;  %v2600_v43 = vpop.permute.xlu1 %2599  ;;  %2470 = vmatpush.bf16.msra.mxu3 %v3050_v58 }
 0x10f   :  { %v1215_v32 = vadd.f32 %v2574_v24, %v920_v30 }
 0x111   :  { %v1274_v36 = vmax.f32 %v1215_v32, 0.0  ;;  %2776 = vset.pattern.permute.xlu0 %v2806_v1  ;;  %v2402_v32 = vunpack.c.l.bf16 %v2455_v19 }
 0x112   :  { %v386_v37 = vpop.f32.mrf.mxu0  ;;  %v1486_v38 = vpop.f32.mrf.mxu1 }
 0x113   :  { %v1324_v39 = vpack.c.bf16 %v1274_v36, %v1273_v33  ;;  %v387_v42 = vadd.f32 %v2942_v62, %v386_v37  ;;  %v1487_v44 = vadd.f32 %v3085_v40, %v1486_v38  ;;  %v2403_v33 = vunpack.c.h.bf16 %v2455_v19  ;;  %2760 = vset.pattern.permute.xlu2 %v2807_v7 }
 0x114   :  { %2762 = vperm.xlu2 %2760, %v3115_v22  }
 0x115   :  { %2192 = vmatmul.msk.bf16.gmra.mxu0 %vm241_vm0, %v2302_v35  ;;  %2229 = vmatmul.msk.bf16.gmra.mxu1 %vm1379_vm3, %v1324_v39  ;;  %v921_v46 = vmul.f32 %v2578_v41, %v387_v42  ;;  %v1635_v59 = vmax.f32 %v1487_v44, 0.0  ;;  %v3127_v38 = vpack.i.bf16 %v2403_v33, %v2402_v32  ;;  %v2304_v44 = vld [vmem:[%s3701_s0 + $0x98] sm:$0xff] }
 0x117   :  { %v1216_v60 = vadd.f32 %v2584_v47, %v921_v46  ;;  %2767 = vperm.xlu1 %2754, %v3127_v38  }
 0x119   :  { %v1275_v8 = vmax.f32 %v1216_v60, 0.0 }
 0x11a   :  { %v388_v49 = vpop.f32.mrf.mxu0  ;;  %v1488_v50 = vpop.f32.mrf.mxu1 }
 0x11b   :  { %v389_v53 = vadd.f32 %v2942_v62, %v388_v49  ;;  %v1489_v54 = vadd.f32 %v3085_v40, %v1488_v50  ;;  %v2601_v49 = vunpack.i.l.bf16 %v2600_v43 }
 0x11c   :  { %2772 = vperm.xlu2 %2760, %v3127_v38  }
 0x11d   :  { %v922_v61 = vmul.f32 %v2579_v45, %v389_v53  ;;  %v1636_v63 = vmax.f32 %v1489_v54, 0.0  ;;  %v2605_v53 = vpop.permute.xlu2 %2604  ;;  %v2434_v54 = vunpack.c.l.bf16 %v2463_v51 }
 0x11e   :  { %v2607_v0 = vunpack.i.h.bf16 %v2605_v53 }
 0x11f   :  { %v1217_v4 = vadd.f32 %v2585_v48, %v922_v61  ;;  %v1694_v5 = vpack.c.bf16 %v1636_v63, %v1635_v59  ;;  %2782 = vset.pattern.permute.xlu1 %v2807_v7  ;;  %v3142_v56 = vpack.i.bf16 %v2435_v55, %v2434_v54  ;;  %v2602_v59 = vunpack.i.h.bf16 %v2600_v43 }
 0x120   :  { %v2606_v63 = vunpack.i.l.bf16 %v2605_v53 }
 0x121   :  { %2255 = vmatmul.msk.bf16.vlgmr.msra.gmra.mxu2 %vm1738_vm5, %v1694_v5  ;;  %v1276_v11 = vmax.f32 %v1217_v4, 0.0  ;;  %2784 = vperm.xlu1 %2782, %v3142_v56  }
 0x122   :  { %v391_v12 = vpop.f32.mrf.mxu0  ;;  %v1491_v13 = vpop.f32.mrf.mxu1  ;;  %2778 = vperm.xlu0 %2776, %v3142_v56  }
 0x123   :  { %v1325_v14 = vpack.c.bf16 %v1276_v11, %v1275_v8  ;;  %v392_v20 = vadd.f32 %v2942_v62, %v391_v12  ;;  %v1492_v25 = vadd.f32 %v3085_v40, %v1491_v13  ;;  %v2456_v11 = vld [vmem:[%s3702_s1 + $0xa8] sm:$0xff]  }
 0x124   :  { %v2406_v12 = vunpack.c.l.bf16 %v2456_v11  ;;  %v2407_v13 = vunpack.c.h.bf16 %v2456_v11  ;;  %2788 = vset.pattern.permute.xlu2 %v2806_v1 }
 0x125   :  { %2193 = vmatmul.msk.bf16.gmra.mxu0 %vm241_vm0, %v2303_v10  ;;  %2230 = vmatmul.msk.bf16.gmra.mxu1 %vm1379_vm3, %v1325_v14  ;;  %v923_v24 = vmul.f32 %v2590_v18, %v392_v20  ;;  %v1637_v34 = vmax.f32 %v1492_v25, 0.0  ;;  %v2611_v20 = vpop.permute.xlu0 %2610  ;;  %v2623_v38 = vpop.permute.xlu2 %2622 }
 0x126   :  { %v2794_v15 = vpack.i.bf16 %v2407_v13, %v2406_v12  ;;  %v2625_v53 = vunpack.i.h.bf16 %v2623_v38  ;;  %v2307_v13 = vld [vmem:[%s3701_s0 + $0xb0] sm:$0xff] }
 0x127   :  { %v1218_v35 = vadd.f32 %v2596_v26, %v923_v24  ;;  %v2612_v26 = vunpack.i.l.bf16 %v2611_v20 }
 0x128   :  { %2790 = vperm.xlu2 %2788, %v2794_v15  }
 0x129   :  { %v1277_v42 = vmax.f32 %v1218_v35, 0.0  ;;  %2795 = vperm.xlu1 %2782, %v2794_v15  }
 0x12a   :  { %v393_v27 = vpop.f32.mrf.mxu0  ;;  %v1493_v28 = vpop.f32.mrf.mxu1  ;;  %2799 = vset.pattern.permute.xlu0 %v2807_v7 }
 0x12b   :  { %v394_v30 = vadd.f32 %v2942_v62, %v393_v27  ;;  %v1494_v31 = vadd.f32 %v3085_v40, %v1493_v28  ;;  %v2617_v28 = vpop.permute.xlu1 %2616 }
 0x12c   :  { %v2619_v52 = vunpack.i.h.bf16 %v2617_v28 }
 0x12d   :  { %v924_v36 = vmul.f32 %v2591_v23, %v394_v30  ;;  %v1638_v37 = vmax.f32 %v1494_v31, 0.0  ;;  %v2618_v31 = vunpack.i.l.bf16 %v2617_v28  ;;  %v2633_v12 = vpop.permute.xlu2 %2632 }
 0x12e   :  { %v2634_v16 = vunpack.i.l.bf16 %v2633_v12 }
 0x12f   :  { %v1219_v39 = vadd.f32 %v2597_v29, %v924_v36  ;;  %v1695_v41 = vpack.c.bf16 %v1638_v37, %v1637_v34  ;;  %v2613_v29 = vunpack.i.h.bf16 %v2611_v20 }
 0x131   :  { %2256 = vmatmul.msk.bf16.gmra.mxu2 %vm1738_vm5, %v1695_v41  ;;  %v1278_v45 = vmax.f32 %v1219_v39, 0.0 }
 0x132   :  { %v396_v46 = vpop.f32.mrf.mxu0  ;;  %v1496_v47 = vpop.f32.mrf.mxu1 }
 0x133   :  { %v1326_v48 = vpack.c.bf16 %v1278_v45, %v1277_v42  ;;  %v397_v50 = vadd.f32 %v2942_v62, %v396_v46  ;;  %v1497_v61 = vadd.f32 %v3085_v40, %v1496_v47  ;;  %v2309_v42 = vld [vmem:[%s3701_s0 + $0xc0] sm:$0xff]  ;;  %v2306_v45 = vld [vmem:[%s3701_s0 + $0xa8] sm:$0xff]  ;;  %v2628_v51 = vpop.permute.xlu1 %2627 }
 0x134   :  { %2199 = vmatmul.msk.bf16.gmra.mxu3 %vm241_vm0, %v2309_v42  ;;  %v2630_v1 = vunpack.i.h.bf16 %v2628_v51 }
 0x135   :  { %2194 = vmatmul.msk.bf16.gmra.mxu0 %vm241_vm0, %v2304_v44  ;;  %2231 = vmatmul.msk.bf16.gmra.mxu1 %vm1379_vm3, %v1326_v48  ;;  %v925_v60 = vmul.f32 %v2601_v49, %v397_v50  ;;  %v1639_v5 = vmax.f32 %v1497_v61, 0.0  ;;  %v2624_v49 = vunpack.i.l.bf16 %v2623_v38 }
 0x137   :  { %v1220_v8 = vadd.f32 %v2606_v63, %v925_v60 }
 0x139   :  { %v1279_v17 = vmax.f32 %v1220_v8, 0.0 }
 0x13a   :  { %v398_v2 = vpop.f32.mrf.mxu0  ;;  %v1498_v57 = vpop.f32.mrf.mxu1 }
 0x13b   :  { %v399_v3 = vadd.f32 %v2942_v62, %v398_v2  ;;  %v1499_v4 = vadd.f32 %v3085_v40, %v1498_v57  ;;  %v3197_v20 = vpop.permute.xlu1 %2644 }
 0x13d   :  { %v926_v9 = vmul.f32 %v2602_v59, %v399_v3  ;;  %v1640_v10 = vmax.f32 %v1499_v4, 0.0  ;;  %v2629_v59 = vunpack.i.l.bf16 %v2628_v51 }
 0x13f   :  { %v1221_v6 = vadd.f32 %v2607_v0, %v926_v9  ;;  %v1696_v14 = vpack.c.bf16 %v1640_v10, %v1639_v5  ;;  %v2310_v9 = vld [vmem:[%s3701_s0 + $0xc8] sm:$0xff] }
 0x141   :  { %v1280_v18 = vmax.f32 %v1221_v6, 0.0  ;;  %2257 = vmatmul.msk.bf16.gmra.mxu2 %vm1738_vm5, %v1696_v14 }
 0x142   :  { %v401_v23 = vpop.f32.mrf.mxu0  ;;  %v1501_v24 = vpop.f32.mrf.mxu1 }
 0x143   :  { %v1327_v25 = vpack.c.bf16 %v1280_v18, %v1279_v17  ;;  %v402_v27 = vadd.f32 %v2942_v62, %v401_v23  ;;  %v1502_v22 = vadd.f32 %v3085_v40, %v1501_v24  ;;  %v2639_v18 = vpop.permute.xlu0 %2638 }
 0x144   :  { %2200 = vmatmul.msk.bf16.gmra.mxu3 %vm241_vm0, %v2310_v9  ;;  %v2641_v28 = vunpack.i.h.bf16 %v2639_v18 }
 0x145   :  { %2195 = vmatmul.msk.bf16.gmra.mxu0 %vm241_vm0, %v2305_v21  ;;  %2232 = vmatmul.msk.bf16.gmra.mxu1 %vm1379_vm3, %v1327_v25  ;;  %v927_v30 = vmul.f32 %v2612_v26, %v402_v27  ;;  %v1641_v35 = vmax.f32 %v1502_v22, 0.0  ;;  %v2635_v21 = vunpack.i.h.bf16 %v2633_v12  ;;  %v2640_v25 = vunpack.i.l.bf16 %v2639_v18  ;;  %v3207_v22 = vpop.permute.xlu2 %2650 }
 0x147   :  { %v1222_v36 = vadd.f32 %v2618_v31, %v927_v30 }
 0x149   :  { %v1281_v43 = vmax.f32 %v1222_v36, 0.0 }
 0x14a   :  { %v403_v19 = vpop.f32.mrf.mxu0  ;;  %v1503_v32 = vpop.f32.mrf.mxu1 }
 0x14b   :  { %v404_v33 = vadd.f32 %v2942_v62, %v403_v19  ;;  %v1504_v34 = vadd.f32 %v3085_v40, %v1503_v32 }
 0x14d   :  { %v928_v37 = vmul.f32 %v2613_v29, %v404_v33  ;;  %v1642_v39 = vmax.f32 %v1504_v34, 0.0  ;;  %v3203_v29 = vld [vmem:[%s3703_s5] ss:$0 sm:$0xff]  ;;  %v2661_v38 = vpop.permute.xlu2 %2660 }
 0x14e   :  { %v2663_v51 = vunpack.i.h.bf16 %v2661_v38 }
 0x14f   :  { %v1223_v41 = vadd.f32 %v2619_v52, %v928_v37  ;;  %v1697_v58 = vpack.c.bf16 %v1642_v39, %v1641_v35  ;;  %v2311_v35 = vld [vmem:[%s3701_s0 + $0xd0] sm:$0xff]  ;;  %v2656_v39 = vpop.permute.xlu1 %2655 }
 0x151   :  { %v1282_v44 = vmax.f32 %v1223_v41, 0.0  ;;  %2258 = vmatmul.msk.bf16.gmra.mxu2 %vm1738_vm5, %v1697_v58 }
 0x152   :  { %v406_v46 = vpop.f32.mrf.mxu0  ;;  %v1506_v47 = vpop.f32.mrf.mxu1 }
 0x153   :  { %v1328_v48 = vpack.c.bf16 %v1282_v44, %v1281_v43  ;;  %v407_v50 = vadd.f32 %v2942_v62, %v406_v46  ;;  %v1507_v55 = vadd.f32 %v3085_v40, %v1506_v47  ;;  %v2657_v43 = vunpack.i.l.bf16 %v2656_v39 }
 0x154   :  { %2201 = vmatmul.msk.bf16.gmra.mxu3 %vm241_vm0, %v2311_v35 }
 0x155   :  { %2196 = vmatmul.msk.bf16.gmra.mxu0 %vm241_vm0, %v2306_v45  ;;  %2233 = vmatmul.msk.bf16.gmra.mxu1 %vm1379_vm3, %v1328_v48  ;;  %v929_v54 = vmul.f32 %v2624_v49, %v407_v50  ;;  %v1643_v57 = vmax.f32 %v1507_v55, 0.0  ;;  %v2658_v45 = vunpack.i.h.bf16 %v2656_v39  ;;  %v2662_v48 = vunpack.i.l.bf16 %v2661_v38 }
 0x157   :  { %v1224_v0 = vadd.f32 %v2629_v59, %v929_v54  ;;  %v3219_v55 = vpop.permute.xlu1 %2672 }
 0x159   :  { %v1283_v10 = vmax.f32 %v1224_v0, 0.0 }
 0x15a   :  { %v408_v60 = vpop.f32.mrf.mxu0  ;;  %v1508_v61 = vpop.f32.mrf.mxu1 }
 0x15b   :  { %v409_v63 = vadd.f32 %v2942_v62, %v408_v60  ;;  %v1509_v2 = vadd.f32 %v3085_v40, %v1508_v61 }
 0x15d   :  { %v930_v3 = vmul.f32 %v2625_v53, %v409_v63  ;;  %v1644_v4 = vmax.f32 %v1509_v2, 0.0 }
 0x15f   :  { %v1225_v5 = vadd.f32 %v2630_v1, %v930_v3  ;;  %v1698_v8 = vpack.c.bf16 %v1644_v4, %v1643_v57  ;;  %v2679_v3 = vpop.permute.xlu2 %2678  ;;  %v2684_v12 = vpop.permute.xlu1 %2683 }
 0x160   :  { %v2680_v9 = vunpack.i.l.bf16 %v2679_v3  ;;  %v2686_v18 = vunpack.i.h.bf16 %v2684_v12 }
 0x161   :  { %v1284_v11 = vmax.f32 %v1225_v5, 0.0  ;;  %2259 = vmatmul.msk.bf16.gmra.mxu2 %vm1738_vm5, %v1698_v8 }
 0x162   :  { %v411_v6 = vpop.f32.mrf.mxu0  ;;  %v1511_v14 = vpop.f32.mrf.mxu1 }
 0x163   :  { %v1329_v15 = vpack.c.bf16 %v1284_v11, %v1283_v10  ;;  %v412_v17 = vadd.f32 %v2942_v62, %v411_v6  ;;  %v1512_v24 = vadd.f32 %v3085_v40, %v1511_v14  ;;  %v2312_v11 = vld [vmem:[%s3701_s0 + $0xd8] sm:$0xff] }
 0x164   :  { %2202 = vmatmul.msk.bf16.gmra.mxu3 %vm241_vm0, %v2312_v11 }
 0x165   :  { %2197 = vmatmul.msk.bf16.gmra.mxu0 %vm241_vm0, %v2307_v13  ;;  %2234 = vmatmul.msk.bf16.gmra.mxu1 %vm1379_vm3, %v1329_v15  ;;  %v931_v23 = vmul.f32 %v2634_v16, %v412_v17  ;;  %v1645_v31 = vmax.f32 %v1512_v24, 0.0  ;;  %v2681_v13 = vunpack.i.h.bf16 %v2679_v3  ;;  %v2685_v15 = vunpack.i.l.bf16 %v2684_v12 }
 0x167   :  { %v1226_v19 = vadd.f32 %v2640_v25, %v931_v23  ;;  %v3231_v24 = vpop.permute.xlu2 %2688 }
 0x169   :  { %v1285_v36 = vmax.f32 %v1226_v19, 0.0 }
 0x16a   :  { %v413_v26 = vpop.f32.mrf.mxu0  ;;  %v1513_v27 = vpop.f32.mrf.mxu1 }
 0x16b   :  { %v414_v62 = vadd.f32 %v3203_v29, %v413_v26  ;;  %v1514_v30 = vadd.f32 %v3085_v40, %v1513_v27 }
 0x16d   :  { %v932_v32 = vmul.f32 %v2635_v21, %v414_v62  ;;  %v1646_v52 = vmax.f32 %v1514_v30, 0.0  ;;  %v3233_v62 = vpop.permute.xlu0 %2666 }
 0x16f   :  { %v1227_v33 = vadd.f32 %v2641_v28, %v932_v32  ;;  %v1699_v34 = vpack.c.bf16 %v1646_v52, %v1645_v31  ;;  %v2701_v52 = vpop.permute.xlu1 %2700  ;;  %v2707_v39 = vpop.permute.xlu2 %2706 }
 0x170   :  { %v2708_v38 = vunpack.i.l.bf16 %v2707_v39 }
 0x171   :  { %v1286_v37 = vmax.f32 %v1227_v33, 0.0  ;;  %2260 = vmatmul.msk.bf16.gmra.mxu2 %vm1738_vm5, %v1699_v34 }
 0x172   :  { %v416_v41 = vpop.f32.mrf.mxu0  ;;  %v1516_v58 = vpop.f32.mrf.mxu1 }
 0x173   :  { %v1330_v42 = vpack.c.bf16 %v1286_v37, %v1285_v36  ;;  %v417_v44 = vadd.f32 %v3203_v29, %v416_v41  ;;  %v1517_v47 = vadd.f32 %v3085_v40, %v1516_v58  ;;  %v2702_v36 = vunpack.i.l.bf16 %v2701_v52  ;;  %v2313_v41 = vld [vmem:[%s3701_s0 + $0xe0] sm:$0xff] }
 0x174   :  { %2203 = vmatmul.msk.bf16.gmra.mxu3 %vm241_vm0, %v2313_v41 }
 0x175   :  { %2235 = vmatmul.msk.bf16.gmra.mxu1 %vm1379_vm3, %v1330_v42  ;;  %v933_v46 = vmul.f32 %v2657_v43, %v417_v44  ;;  %v1647_v59 = vmax.f32 %v1517_v47, 0.0  ;;  %v3241_v58 = vpop.permute.xlu0 %2694  ;;  %v2703_v42 = vunpack.i.h.bf16 %v2701_v52  ;;  %v2709_v47 = vunpack.i.h.bf16 %v2707_v39 }
 0x177   :  { %v1228_v60 = vadd.f32 %v2662_v48, %v933_v46 }
 0x179   :  { %v1287_v57 = vmax.f32 %v1228_v60, 0.0  ;;  %v3249_v60 = vpop.permute.xlu2 %2716 }
 0x17a   :  { %v418_v49 = vpop.f32.mrf.mxu0  ;;  %v1518_v50 = vpop.f32.mrf.mxu1 }
 0x17b   :  { %v419_v53 = vadd.f32 %v3203_v29, %v418_v49  ;;  %v1519_v54 = vadd.f32 %v3085_v40, %v1518_v50  ;;  %v3247_v50 = vpop.permute.xlu1 %2711 }
 0x17d   :  { %v934_v61 = vmul.f32 %v2658_v45, %v419_v53  ;;  %v1648_v1 = vmax.f32 %v1519_v54, 0.0 }
 0x17f   :  { %v1229_v63 = vadd.f32 %v2663_v51, %v934_v61  ;;  %v1700_v2 = vpack.c.bf16 %v1648_v1, %v1647_v59 }
 0x181   :  { %v1288_v0 = vmax.f32 %v1229_v63, 0.0  ;;  %2261 = vmatmul.msk.bf16.gmra.mxu2 %vm1738_vm5, %v1700_v2 }
 0x182   :  { %v421_v4 = vpop.f32.mrf.mxu0  ;;  %v1521_v5 = vpop.f32.mrf.mxu1 }
 0x183   :  { %v1331_v8 = vpack.c.bf16 %v1288_v0, %v1287_v57  ;;  %v422_v10 = vadd.f32 %v3203_v29, %v421_v4  ;;  %v1522_v14 = vadd.f32 %v3085_v40, %v1521_v5  ;;  %v2723_v57 = vpop.permute.xlu0 %2722  ;;  %v3255_v0 = vld [vmem:[%s3703_s5 + $0x2] ss:$0 sm:$0xff] }
 0x184   :  { %v2724_v11 = vunpack.i.l.bf16 %v2723_v57 }
 0x185   :  { %2236 = vmatmul.msk.bf16.gmra.mxu1 %vm1379_vm3, %v1331_v8  ;;  %v935_v6 = vmul.f32 %v2680_v9, %v422_v10  ;;  %v1649_v25 = vmax.f32 %v1522_v14, 0.0  ;;  %v82_v8 = vld [vmem:[%s3701_s0 + $0xe8] sm:$0xf] }
 0x186   :  { %v204_v10 = vunpack.c.l.b16 %v82_v8 }
 0x187   :  { %v1230_v26 = vadd.f32 %v2685_v15, %v935_v6  ;;  %v3267_v15 = vpop.permute.xlu2 %2734 }
 0x188   :  { %v234_v14 = vpack.c.b16 %v204_v10, %v204_v10 }
 0x189   :  { %v1289_v19 = vmax.f32 %v1230_v26, 0.0 }
 0x18a   :  { %v423_v16 = vpop.f32.mrf.mxu0  ;;  %v1523_v17 = vpop.f32.mrf.mxu1  ;;  %2204 = vmatmul.msk.bf16.gmra.mxu3 %vm241_vm0, %v234_v14 }
 0x18b   :  { %v424_v21 = vadd.f32 %v3203_v29, %v423_v16  ;;  %v1524_v23 = vadd.f32 %v3085_v40, %v1523_v17  ;;  %v2725_v17 = vunpack.i.h.bf16 %v2723_v57 }
 0x18d   :  { %v936_v27 = vmul.f32 %v2681_v13, %v424_v21  ;;  %v1650_v28 = vmax.f32 %v1524_v23, 0.0  ;;  %v2729_v13 = vpop.permute.xlu1 %2728 }
 0x18e   :  { %v2730_v21 = vunpack.i.l.bf16 %v2729_v13  ;;  %v2731_v26 = vunpack.i.h.bf16 %v2729_v13 }
 0x18f   :  { %v1231_v30 = vadd.f32 %v2686_v18, %v936_v27  ;;  %v1701_v31 = vpack.c.bf16 %v1650_v28, %v1649_v25  ;;  %v2745_v41 = vpop.permute.xlu2 %2744 }
 0x191   :  { %v1290_v32 = vmax.f32 %v1231_v30, 0.0  ;;  %2262 = vmatmul.msk.bf16.gmra.mxu2 %vm1738_vm5, %v1701_v31 }
 0x192   :  { %v426_v33 = vpop.f32.mrf.mxu0  ;;  %v1526_v34 = vpop.f32.mrf.mxu1 }
 0x193   :  { %v1332_v35 = vpack.c.bf16 %v1290_v32, %v1289_v19  ;;  %v427_v37 = vadd.f32 %v3203_v29, %v426_v33  ;;  %v1527_v44 = vadd.f32 %v3085_v40, %v1526_v34 }
 0x195   :  { %2237 = vmatmul.msk.bf16.gmra.mxu1 %vm1379_vm3, %v1332_v35  ;;  %v937_v43 = vmul.f32 %v2702_v36, %v427_v37  ;;  %v1651_v51 = vmax.f32 %v1527_v44, 0.0  ;;  %v3274_v34 = vpop.permute.xlu1 %2739 }
 0x197   :  { %v1232_v53 = vadd.f32 %v2708_v38, %v937_v43 }
 0x199   :  { %v1291_v63 = vmax.f32 %v1232_v53, 0.0 }
 0x19a   :  { %v428_v45 = vpop.f32.mrf.mxu0  ;;  %v1528_v46 = vpop.f32.mrf.mxu1 }
 0x19b   :  { %v429_v48 = vadd.f32 %v3203_v29, %v428_v45  ;;  %v1529_v49 = vadd.f32 %v3085_v40, %v1528_v46  ;;  %v2746_v45 = vunpack.i.l.bf16 %v2745_v41 }
 0x19d   :  { %v938_v54 = vmul.f32 %v2703_v42, %v429_v48  ;;  %v1652_v59 = vmax.f32 %v1529_v49, 0.0  ;;  %v2751_v48 = vpop.permute.xlu0 %2750  ;;  %v3289_v56 = vpop.permute.xlu1 %2756 }
 0x19f   :  { %v1233_v61 = vadd.f32 %v2709_v47, %v938_v54  ;;  %v1702_v1 = vpack.c.bf16 %v1652_v59, %v1651_v51  ;;  %v2747_v51 = vunpack.i.h.bf16 %v2745_v41  ;;  %v2752_v54 = vunpack.i.l.bf16 %v2751_v48 }
 0x1a1   :  { %v1292_v2 = vmax.f32 %v1233_v61, 0.0  ;;  %2263 = vmatmul.msk.bf16.gmra.mxu2 %vm1738_vm5, %v1702_v1  ;;  %v548_v1 = vld [vmem:[%s3702_s1 + $0xe8] sm:$0xf] }
 0x1a2   :  { %v431_v3 = vpop.f32.mrf.mxu0  ;;  %v1531_v4 = vpop.f32.mrf.mxu1 }
 0x1a3   :  { %v1333_v5 = vpack.c.bf16 %v1292_v2, %v1291_v63  ;;  %v432_v12 = vadd.f32 %v3203_v29, %v431_v3  ;;  %v1532_v16 = vadd.f32 %v3085_v40, %v1531_v4  ;;  %v2753_v63 = vunpack.i.h.bf16 %v2751_v48  ;;  %v3298_v3 = vpop.permute.xlu2 %2762 }
 0x1a4   :  { %v1842_v9 = vpop.f32.mrf.mxu2  ;;  %v607_v4 = vunpack.c.l.bf16 %v548_v1  ;;  %v2669_v1 = vunpack.i.h.bf16 %v3233_v62 }
 0x1a5   :  { %v1843_v6 = vadd.f32 %v3255_v0, %v1842_v9  ;;  %2238 = vmatmul.msk.bf16.gmra.mxu1 %vm1379_vm3, %v1333_v5  ;;  %v939_v18 = vmul.f32 %v2724_v11, %v432_v12  ;;  %v1653_v30 = vmax.f32 %v1532_v16, 0.0  ;;  %v2768_v16 = vpop.permute.xlu1 %2767 }
 0x1a6   :  { %1195 = vperm.xlu0 %2799, %v607_v4   ;;  %900 = vperm.xlu2 %2788, %v607_v4  }
 0x1a7   :  { %1992 = vst.msk [vmem:[%s3706_s6] sm:$0xff] %vm1991_vm6, %v1843_v6  ;;  %v1234_v19 = vadd.f32 %v2730_v21, %v939_v18 }
 0x1a9   :  { %v1293_v37 = vmax.f32 %v1234_v19, 0.0 }
 0x1aa   :  { %v433_v23 = vpop.f32.mrf.mxu0  ;;  %v1533_v25 = vpop.f32.mrf.mxu1 }
 0x1ab   :  { %v434_v27 = vadd.f32 %v3203_v29, %v433_v23  ;;  %v1534_v28 = vadd.f32 %v3085_v40, %v1533_v25  ;;  %v2769_v23 = vunpack.i.l.bf16 %v2768_v16 }
 0x1ac   :  { %v1844_v31 = vpop.f32.mrf.mxu2 }
 0x1ad   :  { %v940_v32 = vmul.f32 %v2725_v17, %v434_v27  ;;  %v1654_v52 = vmax.f32 %v1534_v28, 0.0  ;;  %v1845_v33 = vadd.f32 %v3255_v0, %v1844_v31  ;;  %v2773_v27 = vpop.permute.xlu2 %2772  ;;  %v2668_v31 = vunpack.i.l.bf16 %v3233_v62 }
 0x1ae   :  { %v2775_v41 = vunpack.i.h.bf16 %v2773_v27 }
 0x1af   :  { %v1235_v35 = vadd.f32 %v2731_v26, %v940_v32  ;;  %1993 = vst.msk [vmem:[%s3706_s6 + $0x8] sm:$0xff] %vm1991_vm6, %v1845_v33  ;;  %v1703_v36 = vpack.c.bf16 %v1654_v52, %v1653_v30  ;;  %v456_v30 = vpop.f32.mrf.mxu3  ;;  %v2774_v52 = vunpack.i.l.bf16 %v2773_v27  ;;  %v2674_v33 = vunpack.i.l.bf16 %v3219_v55 }
 0x1b1   :  { %v1294_v39 = vmax.f32 %v1235_v35, 0.0  ;;  %2264 = vmatmul.msk.bf16.gmra.mxu2 %vm1738_vm5, %v1703_v36  ;;  %v2770_v35 = vunpack.i.h.bf16 %v2768_v16  ;;  %v457_v36 = vadd.f32 %v3203_v29, %v456_v30 }
 0x1b2   :  { %v436_v42 = vpop.f32.mrf.mxu0  ;;  %v1536_v43 = vpop.f32.mrf.mxu1 }
 0x1b3   :  { %v1334_v44 = vpack.c.bf16 %v1294_v39, %v1293_v37  ;;  %v437_v46 = vadd.f32 %v3203_v29, %v436_v42  ;;  %v1537_v49 = vadd.f32 %v3085_v40, %v1536_v43 }
 0x1b4   :  { %v1847_v38 = vpop.f32.mrf.mxu2 }
 0x1b5   :  { %v1848_v47 = vadd.f32 %v3255_v0, %v1847_v38  ;;  %2239 = vmatmul.msk.bf16.gmra.mxu1 %vm1379_vm3, %v1334_v44  ;;  %v941_v53 = vmul.f32 %v2746_v45, %v437_v46  ;;  %v1655_v5 = vmax.f32 %v1537_v49, 0.0  ;;  %v949_v44 = vmul.f32 %v2668_v31, %v457_v36  ;;  %v3319_v46 = vpop.permute.xlu1 %2784 }
 0x1b7   :  { %1994 = vst.msk [vmem:[%s3706_s6 + $0x10] sm:$0xff] %vm1991_vm6, %v1848_v47  ;;  %v1236_v7 = vadd.f32 %v2752_v54, %v941_v53  ;;  %v1244_v53 = vadd.f32 %v2674_v33, %v949_v44  ;;  %v458_v54 = vpop.f32.mrf.mxu3 }
 0x1b9   :  { %v1295_v6 = vmax.f32 %v1236_v7, 0.0 }
 0x1ba   :  { %v438_v59 = vpop.f32.mrf.mxu0  ;;  %v1538_v61 = vpop.f32.mrf.mxu1 }
 0x1bb   :  { %v439_v2 = vadd.f32 %v3203_v29, %v438_v59  ;;  %v1539_v57 = vadd.f32 %v3085_v40, %v1538_v61 }
 0x1bc   :  { %v1849_v8 = vpop.f32.mrf.mxu2 }
 0x1bd   :  { %v942_v9 = vmul.f32 %v2747_v51, %v439_v2  ;;  %v1656_v10 = vmax.f32 %v1539_v57, 0.0  ;;  %v1850_v11 = vadd.f32 %v3255_v0, %v1849_v8  ;;  %v2791_v57 = vpop.permute.xlu2 %2790  ;;  %v2675_v8 = vunpack.i.h.bf16 %v3219_v55 }
 0x1be   :  { %v1303_v55 = vmax.f32 %v1244_v53, 0.0 }
 0x1bf   :  { %v1237_v12 = vadd.f32 %v2753_v63, %v942_v9  ;;  %v1704_v13 = vpack.c.bf16 %v1656_v10, %v1655_v5  ;;  %1995 = vst.msk [vmem:[%s3706_s6 + $0x18] sm:$0xff] %vm1991_vm6, %v1850_v11  ;;  %v459_v9 = vadd.f32 %v3203_v29, %v458_v54  ;;  %v2690_v10 = vunpack.i.l.bf16 %v3231_v24  ;;  %v461_v16 = vpop.f32.mrf.mxu3 }
 0x1c1   :  { %v1296_v14 = vmax.f32 %v1237_v12, 0.0  ;;  %2265 = vmatmul.msk.bf16.gmra.mxu2 %vm1738_vm5, %v1704_v13  ;;  %v2792_v12 = vunpack.i.l.bf16 %v2791_v57 }
 0x1c2   :  { %v441_v17 = vpop.f32.mrf.mxu0  ;;  %v1541_v18 = vpop.f32.mrf.mxu1 }
 0x1c3   :  { %v1335_v21 = vpack.c.bf16 %v1296_v14, %v1295_v6  ;;  %v442_v25 = vadd.f32 %v3203_v29, %v441_v17  ;;  %v1542_v32 = vadd.f32 %v3085_v40, %v1541_v18  ;;  %v950_v6 = vmul.f32 %v2669_v1, %v459_v9  ;;  %v2796_v14 = vpop.permute.xlu1 %2795 }
 0x1c4   :  { %v1852_v26 = vpop.f32.mrf.mxu2  ;;  %v2696_v17 = vunpack.i.l.bf16 %v3241_v58  ;;  %v2797_v27 = vunpack.i.l.bf16 %v2796_v14  ;;  %v2798_v31 = vunpack.i.h.bf16 %v2796_v14 }
 0x1c5   :  { %v1853_v28 = vadd.f32 %v3255_v0, %v1852_v26  ;;  %2240 = vmatmul.msk.bf16.gmra.mxu1 %vm1379_vm3, %v1335_v21  ;;  %v943_v19 = vmul.f32 %v2769_v23, %v442_v25  ;;  %v1657_v38 = vmax.f32 %v1542_v32, 0.0  ;;  %v1245_v18 = vadd.f32 %v2675_v8, %v950_v6 }
 0x1c6   :  { %v462_v21 = vadd.f32 %v3203_v29, %v461_v16  ;;  %v2793_v23 = vunpack.i.h.bf16 %v2791_v57  ;;  %v2713_v8 = vunpack.i.l.bf16 %v3247_v50 }
 0x1c7   :  { %1996 = vst.msk [vmem:[%s3706_s6 + $0x20] sm:$0xff] %vm1991_vm6, %v1853_v28  ;;  %v1238_v45 = vadd.f32 %v2774_v52, %v943_v19  ;;  %v1304_v30 = vmax.f32 %v1245_v18, 0.0  ;;  %v2647_v18 = vunpack.i.h.bf16 %v3197_v20 }
 0x1c8   :  { %v951_v28 = vmul.f32 %v2690_v10, %v462_v21 }
 0x1c9   :  { %v1297_v63 = vmax.f32 %v1238_v45, 0.0  ;;  %v3343_v36 = vpack.c.bf16 %v1304_v30, %v1303_v55  ;;  %v463_v45 = vpop.f32.mrf.mxu3 }
 0x1ca   :  { %v443_v37 = vpop.f32.mrf.mxu0  ;;  %v1543_v39 = vpop.f32.mrf.mxu1 }
 0x1cb   :  { %v444_v42 = vadd.f32 %v3203_v29, %v443_v37  ;;  %v1544_v43 = vadd.f32 %v3085_v40, %v1543_v39  ;;  %v2691_v37 = vunpack.i.h.bf16 %v3231_v24  ;;  %v2646_v24 = vunpack.i.l.bf16 %v3197_v20 }
 0x1cc   :  { %v1854_v47 = vpop.f32.mrf.mxu2 }
 0x1cd   :  { %v944_v48 = vmul.f32 %v2770_v35, %v444_v42  ;;  %v1658_v49 = vmax.f32 %v1544_v43, 0.0  ;;  %v1855_v51 = vadd.f32 %v3255_v0, %v1854_v47  ;;  %v1246_v35 = vadd.f32 %v2696_v17, %v951_v28 }
 0x1ce   :  { %v2697_v47 = vunpack.i.h.bf16 %v3241_v58  ;;  %v2714_v28 = vunpack.i.h.bf16 %v3247_v50 }
 0x1cf   :  { %v1239_v59 = vadd.f32 %v2775_v41, %v944_v48  ;;  %v1705_v61 = vpack.c.bf16 %v1658_v49, %v1657_v38  ;;  %1997 = vst.msk [vmem:[%s3706_s6 + $0x28] sm:$0xff] %vm1991_vm6, %v1855_v51  ;;  %v464_v51 = vadd.f32 %v3203_v29, %v463_v45  ;;  %v1305_v57 = vmax.f32 %v1246_v35, 0.0 }
 0x1d1   :  { %v1298_v2 = vmax.f32 %v1239_v59, 0.0  ;;  %2266 = vmatmul.msk.bf16.gmra.mxu2 %vm1738_vm5, %v1705_v61  ;;  %v952_v59 = vmul.f32 %v2691_v37, %v464_v51  ;;  %v2652_v61 = vunpack.i.l.bf16 %v3207_v22 }
 0x1d2   :  { %v446_v4 = vpop.f32.mrf.mxu0  ;;  %v1546_v5 = vpop.f32.mrf.mxu1 }
 0x1d3   :  { %v1336_v7 = vpack.c.bf16 %v1298_v2, %v1297_v63  ;;  %v447_v13 = vadd.f32 %v3203_v29, %v446_v4  ;;  %v1547_v25 = vadd.f32 %v3085_v40, %v1546_v5  ;;  %v1247_v4 = vadd.f32 %v2697_v47, %v952_v59 }
 0x1d4   :  { %v1857_v11 = vpop.f32.mrf.mxu2 }
 0x1d5   :  { %v1858_v62 = vadd.f32 %v3255_v0, %v1857_v11  ;;  %2241 = vmatmul.msk.bf16.gmra.mxu1 %vm1379_vm3, %v1336_v7  ;;  %v945_v26 = vmul.f32 %v2792_v12, %v447_v13  ;;  %v1659_v39 = vmax.f32 %v1547_v25, 0.0  ;;  %v1306_v10 = vmax.f32 %v1247_v4, 0.0  ;;  %v466_v11 = vpop.f32.mrf.mxu3 }
 0x1d6   :  { %v2718_v12 = vunpack.i.l.bf16 %v3249_v60 }
 0x1d7   :  { %1998 = vst.msk [vmem:[%s3706_s6 + $0x30] sm:$0xff] %vm1991_vm6, %v1858_v62  ;;  %v1240_v42 = vadd.f32 %v2797_v27, %v945_v26  ;;  %v467_v62 = vadd.f32 %v3203_v29, %v466_v11  ;;  %v3366_v6 = vpack.c.bf16 %v1306_v10, %v1305_v57  ;;  %v2653_v27 = vunpack.i.h.bf16 %v3207_v22 }
 0x1d9   :  { %v1299_v53 = vmax.f32 %v1240_v42, 0.0  ;;  %v953_v16 = vmul.f32 %v2713_v8, %v467_v62  ;;  %v2742_v8 = vunpack.i.h.bf16 %v3274_v34 }
 0x1da   :  { %v448_v19 = vpop.f32.mrf.mxu0  ;;  %v1548_v32 = vpop.f32.mrf.mxu1 }
 0x1db   :  { %v449_v52 = vadd.f32 %v3203_v29, %v448_v19  ;;  %v1549_v33 = vadd.f32 %v3085_v40, %v1548_v32  ;;  %v1248_v26 = vadd.f32 %v2718_v12, %v953_v16  ;;  %v2758_v16 = vunpack.i.l.bf16 %v3289_v56 }
 0x1dc   :  { %v1859_v41 = vpop.f32.mrf.mxu2 }
 0x1dd   :  { %v946_v43 = vmul.f32 %v2793_v23, %v449_v52  ;;  %v1660_v44 = vmax.f32 %v1549_v33, 0.0  ;;  %v1860_v38 = vadd.f32 %v3255_v0, %v1859_v41  ;;  %v3374_v23 = vld [vmem:[%s3703_s5 + $0x1] ss:$0 sm:$0xff]  ;;  %v468_v32 = vpop.f32.mrf.mxu3  ;;  %v2719_v52 = vunpack.i.h.bf16 %v3249_v60 }
 0x1de   :  { %v469_v22 = vadd.f32 %v3203_v29, %v468_v32  ;;  %v2736_v60 = vunpack.i.l.bf16 %v3267_v15 }
 0x1df   :  { %v1241_v48 = vadd.f32 %v2798_v31, %v946_v43  ;;  %v1706_v49 = vpack.c.bf16 %v1660_v44, %v1659_v39  ;;  %1999 = vst.msk [vmem:[%s3706_s6 + $0x38] sm:$0xff] %vm1991_vm6, %v1860_v38  ;;  %v1307_v43 = vmax.f32 %v1248_v26, 0.0 }
 0x1e0   :  { %v954_v39 = vmul.f32 %v2714_v28, %v469_v22 }
 0x1e1   :  { %v1300_v54 = vmax.f32 %v1241_v48, 0.0  ;;  %2267 = vmatmul.msk.bf16.gmra.mxu2 %vm1738_vm5, %v1706_v49  ;;  %v2741_v49 = vunpack.i.l.bf16 %v3274_v34 }
 0x1e2   :  { %v451_v1 = vpop.f32.mrf.mxu0  ;;  %v1551_v58 = vpop.f32.mrf.mxu1  ;;  %v1249_v44 = vadd.f32 %v2719_v52, %v954_v39 }
 0x1e3   :  { %v1337_v63 = vpack.c.bf16 %v1300_v54, %v1299_v53  ;;  %v452_v2 = vadd.f32 %v3203_v29, %v451_v1  ;;  %v1552_v14 = vadd.f32 %v3085_v40, %v1551_v58 }
 0x1e4   :  { %v1862_v5 = vpop.f32.mrf.mxu2  ;;  %v1308_v47 = vmax.f32 %v1249_v44, 0.0 }
 0x1e5   :  { %v947_v7 = vmul.f32 %v2646_v24, %v452_v2  ;;  %v1863_v9 = vadd.f32 %v3255_v0, %v1862_v5  ;;  %2242 = vmatmul.msk.bf16.gmra.mxu1 %vm1379_vm3, %v1337_v63  ;;  %v1661_v30 = vmax.f32 %v1552_v14, 0.0  ;;  %v471_v48 = vpop.f32.mrf.mxu3  ;;  %v2737_v63 = vunpack.i.h.bf16 %v3267_v15 }
 0x1e6   :  { %v472_v51 = vadd.f32 %v3203_v29, %v471_v48  ;;  %v3396_v24 = vpack.c.bf16 %v1308_v47, %v1307_v43 }
 0x1e7   :  { %v1242_v13 = vadd.f32 %v2652_v61, %v947_v7  ;;  %2000 = vst.msk [vmem:[%s3706_s6 + $0x40] sm:$0xff] %vm1991_vm6, %v1863_v9 }
 0x1e8   :  { %v955_v54 = vmul.f32 %v2736_v60, %v472_v51 }
 0x1e9   :  { %v1301_v37 = vmax.f32 %v1242_v13, 0.0 }
 0x1ea   :  { %v453_v17 = vpop.f32.mrf.mxu0  ;;  %v1553_v55 = vpop.f32.mrf.mxu1  ;;  %v1250_v1 = vadd.f32 %v2741_v49, %v955_v54 }
 0x1eb   :  { %v454_v21 = vadd.f32 %v3203_v29, %v453_v17  ;;  %v1554_v25 = vadd.f32 %v3374_v23, %v1553_v55 }
 0x1ec   :  { %v1864_v40 = vpop.f32.mrf.mxu2  ;;  %v1309_v15 = vmax.f32 %v1250_v1, 0.0 }
 0x1ed   :  { %v948_v31 = vmul.f32 %v2647_v18, %v454_v21  ;;  %v1662_v19 = vmax.f32 %v1554_v25, 0.0  ;;  %v1865_v20 = vadd.f32 %v3255_v0, %v1864_v40  ;;  %v473_v5 = vpop.f32.mrf.mxu3  ;;  %v2764_v21 = vunpack.i.l.bf16 %v3298_v3 }
 0x1ee   :  { %v474_v9 = vadd.f32 %v3203_v29, %v473_v5 }
 0x1ef   :  { %v1243_v33 = vadd.f32 %v2653_v27, %v948_v31  ;;  %v1707_v35 = vpack.c.bf16 %v1662_v19, %v1661_v30  ;;  %2001 = vst.msk [vmem:[%s3706_s6 + $0x48] sm:$0xff] %vm1991_vm6, %v1865_v20  ;;  %v2759_v20 = vunpack.i.h.bf16 %v3289_v56 }
 0x1f0   :  { %v956_v10 = vmul.f32 %v2737_v63, %v474_v9 }
 0x1f1   :  { %v1302_v50 = vmax.f32 %v1243_v33, 0.0  ;;  %2268 = vmatmul.msk.bf16.gmra.mxu2 %vm1738_vm5, %v1707_v35  ;;  %v2765_v33 = vunpack.i.h.bf16 %v3298_v3 }
 0x1f2   :  { %v1556_v41 = vpop.f32.mrf.mxu1  ;;  %v1251_v12 = vadd.f32 %v2742_v8, %v956_v10 }
 0x1f3   :  { %v1338_v42 = vpack.c.bf16 %v1302_v50, %v1301_v37  ;;  %v1557_v53 = vadd.f32 %v3374_v23, %v1556_v41 }
 0x1f4   :  { %v1867_v38 = vpop.f32.mrf.mxu2  ;;  %v1310_v34 = vmax.f32 %v1251_v12, 0.0 }
 0x1f5   :  { %v1868_v45 = vadd.f32 %v3255_v0, %v1867_v38  ;;  %2243 = vmatmul.msk.bf16.vlgmr.msrb.gmra.mxu3 %vm1379_vm3, %v1338_v42  ;;  %v1663_v2 = vmax.f32 %v1557_v53, 0.0  ;;  %v476_v18 = vpop.f32.mrf.mxu3 }
 0x1f6   :  { %v3416_v14 = vpack.c.bf16 %v1310_v34, %v1309_v15 }
 0x1f7   :  { %2002 = vst.msk [vmem:[%s3706_s6 + $0x50] sm:$0xff] %vm1991_vm6, %v1868_v45 }
 0x1fa   :  { %v1558_v59 = vpop.f32.mrf.mxu1 }
 0x1fb   :  { %v1559_v61 = vadd.f32 %v3374_v23, %v1558_v59 }
 0x1fc   :  { %v1869_v58 = vpop.f32.mrf.mxu2 }
 0x1fd   :  { %v1664_v57 = vmax.f32 %v1559_v61, 0.0  ;;  %v1870_v4 = vadd.f32 %v3255_v0, %v1869_v58  ;;  %v478_v52 = vpop.f32.mrf.mxu3 }
 0x1fe   :  { %v479_v35 = vadd.f32 %v3203_v29, %v478_v52 }
 0x1ff   :  { %v1708_v7 = vpack.c.bf16 %v1664_v57, %v1663_v2  ;;  %2003 = vst.msk [vmem:[%s3706_s6 + $0x58] sm:$0xff] %vm1991_vm6, %v1870_v4 }
 0x200   :  { %v958_v50 = vmul.f32 %v2759_v20, %v479_v35 }
 0x201   :  { %2269 = vmatmul.msk.bf16.gmra.mxu2 %vm1738_vm5, %v1708_v7 }
 0x202   :  { %v1561_v11 = vpop.f32.mrf.mxu1  ;;  %v1253_v39 = vadd.f32 %v2765_v33, %v958_v50 }
 0x203   :  { %v1562_v17 = vadd.f32 %v3374_v23, %v1561_v11 }
 0x204   :  { %v1872_v13 = vpop.f32.mrf.mxu2  ;;  %v1312_v42 = vmax.f32 %v1253_v39, 0.0 }
 0x205   :  { %v1873_v62 = vadd.f32 %v3255_v0, %v1872_v13  ;;  %2244 = vmatmul.msk.bf16.gmra.mxu3 %vm1379_vm3, %v3343_v36  ;;  %v477_v36 = vadd.f32 %v3203_v29, %v476_v18  ;;  %v1665_v27 = vmax.f32 %v1562_v17, 0.0  ;;  %v481_v43 = vpop.f32.mrf.mxu3 }
 0x207   :  { %2004 = vst.msk [vmem:[%s3706_s6 + $0x60] sm:$0xff] %vm1991_vm6, %v1873_v62  ;;  %v957_v30 = vmul.f32 %v2758_v16, %v477_v36 }
 0x209   :  { %v1252_v19 = vadd.f32 %v2764_v21, %v957_v30 }
 0x20a   :  { %v1563_v55 = vpop.f32.mrf.mxu1 }
 0x20b   :  { %v1564_v25 = vadd.f32 %v3374_v23, %v1563_v55  ;;  %v1311_v56 = vmax.f32 %v1252_v19, 0.0  ;;  %v482_v55 = vadd.f32 %v3203_v29, %v481_v43 }
 0x20c   :  { %v1874_v26 = vpop.f32.mrf.mxu2 }
 0x20d   :  { %v1666_v28 = vmax.f32 %v1564_v25, 0.0  ;;  %v1875_v40 = vadd.f32 %v3255_v0, %v1874_v26  ;;  %v1343_v38 = vpack.c.bf16 %v1312_v42, %v1311_v56  ;;  %v483_v51 = vpop.f32.mrf.mxu3 }
 0x20e   :  { %v484_v25 = vadd.f32 %v3203_v29, %v483_v51 }
 0x20f   :  { %v1709_v31 = vpack.c.bf16 %v1666_v28, %v1665_v27  ;;  %2005 = vst.msk [vmem:[%s3706_s6 + $0x68] sm:$0xff] %vm1991_vm6, %v1875_v40  ;;  %v2787_v27 = vunpack.i.h.bf16 %v3319_v46  ;;  %v2786_v28 = vunpack.i.l.bf16 %v3319_v46 }
 0x211   :  { %2270 = vmatmul.msk.bf16.gmra.mxu2 %vm1738_vm5, %v1709_v31 }
 0x212   :  { %v1566_v32 = vpop.f32.mrf.mxu1 }
 0x213   :  { %v1567_v41 = vadd.f32 %v3374_v23, %v1566_v32 }
 0x214   :  { %v1877_v22 = vpop.f32.mrf.mxu2 }
 0x215   :  { %v1878_v37 = vadd.f32 %v3255_v0, %v1877_v22  ;;  %2245 = vmatmul.msk.bf16.gmra.mxu3 %vm1379_vm3, %v3366_v6  ;;  %v1667_v45 = vmax.f32 %v1567_v41, 0.0  ;;  %v486_v58 = vpop.f32.mrf.mxu3 }
 0x216   :  { %v487_v41 = vadd.f32 %v3203_v29, %v486_v58 }
 0x217   :  { %2006 = vst.msk [vmem:[%s3706_s6 + $0x70] sm:$0xff] %vm1991_vm6, %v1878_v37 }
 0x21a   :  { %v1568_v3 = vpop.f32.mrf.mxu1 }
 0x21b   :  { %v1569_v44 = vadd.f32 %v3374_v23, %v1568_v3  ;;  %v901_v3 = vpop.permute.xlu2 %900 }
 0x21c   :  { %v1879_v60 = vpop.f32.mrf.mxu2 }
 0x21d   :  { %v1668_v47 = vmax.f32 %v1569_v44, 0.0  ;;  %v1880_v6 = vadd.f32 %v3255_v0, %v1879_v60  ;;  %v488_v8 = vpop.f32.mrf.mxu3 }
 0x21f   :  { %v1710_v48 = vpack.c.bf16 %v1668_v47, %v1667_v45  ;;  %2007 = vst.msk [vmem:[%s3706_s6 + $0x78] sm:$0xff] %vm1991_vm6, %v1880_v6 }
 0x221   :  { %2271 = vmatmul.msk.bf16.gmra.mxu2 %vm1738_vm5, %v1710_v48 }
 0x222   :  { %v1571_v49 = vpop.f32.mrf.mxu1 }
 0x223   :  { %v1572_v59 = vadd.f32 %v3374_v23, %v1571_v49 }
 0x224   :  { %v1882_v53 = vpop.f32.mrf.mxu2 }
 0x225   :  { %v1883_v54 = vadd.f32 %v3255_v0, %v1882_v53  ;;  %2246 = vmatmul.msk.bf16.gmra.mxu3 %vm1379_vm3, %v3396_v24  ;;  %v1669_v2 = vmax.f32 %v1572_v59, 0.0 }
 0x227   :  { %2008 = vst.msk [vmem:[%s3706_s6 + $0x80] sm:$0xff] %vm1991_vm6, %v1883_v54 }
 0x22a   :  { %v1573_v61 = vpop.f32.mrf.mxu1 }
 0x22b   :  { %v1574_v1 = vadd.f32 %v3374_v23, %v1573_v61 }
 0x22c   :  { %v1884_v63 = vpop.f32.mrf.mxu2 }
 0x22d   :  { %v1670_v57 = vmax.f32 %v1574_v1, 0.0  ;;  %v1885_v4 = vadd.f32 %v3255_v0, %v1884_v63 }
 0x22f   :  { %v1711_v5 = vpack.c.bf16 %v1670_v57, %v1669_v2  ;;  %2009 = vst.msk [vmem:[%s3706_s6 + $0x88] sm:$0xff] %vm1991_vm6, %v1885_v4 }
 0x231   :  { %2272 = vmatmul.msk.bf16.gmra.mxu2 %vm1738_vm5, %v1711_v5 }
 0x232   :  { %v1576_v24 = vpop.f32.mrf.mxu1 }
 0x233   :  { %v1577_v10 = vadd.f32 %v3374_v23, %v1576_v24 }
 0x234   :  { %v1887_v7 = vpop.f32.mrf.mxu2 }
 0x235   :  { %v1888_v9 = vadd.f32 %v3255_v0, %v1887_v7  ;;  %2247 = vmatmul.msk.bf16.gmra.mxu3 %vm1379_vm3, %v3416_v14  ;;  %v1671_v13 = vmax.f32 %v1577_v10, 0.0  ;;  %v2779_v14 = vpop.permute.xlu0 %2778 }
 0x236   :  { %v2781_v18 = vunpack.i.h.bf16 %v2779_v14  ;;  %v2780_v21 = vunpack.i.l.bf16 %v2779_v14 }
 0x237   :  { %2010 = vst.msk [vmem:[%s3706_s6 + $0x90] sm:$0xff] %vm1991_vm6, %v1888_v9 }
 0x238   :  { %v959_v40 = vmul.f32 %v2780_v21, %v482_v55  ;;  %v960_v30 = vmul.f32 %v2781_v18, %v484_v25 }
 0x23a   :  { %v1578_v11 = vpop.f32.mrf.mxu1  ;;  %v1254_v20 = vadd.f32 %v2786_v28, %v959_v40  ;;  %v1255_v32 = vadd.f32 %v2787_v27, %v960_v30 }
 0x23b   :  { %v1579_v15 = vadd.f32 %v3374_v23, %v1578_v11 }
 0x23c   :  { %v1889_v12 = vpop.f32.mrf.mxu2  ;;  %v1313_v46 = vmax.f32 %v1254_v20, 0.0  ;;  %v1314_v50 = vmax.f32 %v1255_v32, 0.0 }
 0x23d   :  { %v1672_v62 = vmax.f32 %v1579_v15, 0.0  ;;  %v1890_v34 = vadd.f32 %v3255_v0, %v1889_v12  ;;  %v1196_v60 = vpop.permute.xlu0 %1195 }
 0x23e   :  { %v1344_v42 = vpack.c.bf16 %v1314_v50, %v1313_v46 }
 0x23f   :  { %v1712_v16 = vpack.c.bf16 %v1672_v62, %v1671_v13  ;;  %2011 = vst.msk [vmem:[%s3706_s6 + $0x98] sm:$0xff] %vm1991_vm6, %v1890_v34 }
 0x241   :  { %2273 = vmatmul.msk.bf16.gmra.mxu2 %vm1738_vm5, %v1712_v16 }
 0x242   :  { %v1581_v17 = vpop.f32.mrf.mxu1 }
 0x243   :  { %v1582_v31 = vadd.f32 %v3374_v23, %v1581_v17 }
 0x244   :  { %v1892_v36 = vpop.f32.mrf.mxu2 }
 0x245   :  { %v1893_v26 = vadd.f32 %v3255_v0, %v1892_v36  ;;  %2248 = vmatmul.msk.bf16.gmra.mxu3 %vm1379_vm3, %v1343_v38  ;;  %v1673_v35 = vmax.f32 %v1582_v31, 0.0  ;;  %v961_v38 = vmul.f32 %v901_v3, %v487_v41 }
 0x247   :  { %2012 = vst.msk [vmem:[%s3706_s6 + $0xa0] sm:$0xff] %vm1991_vm6, %v1893_v26  ;;  %v1256_v6 = vadd.f32 %v1196_v60, %v961_v38 }
 0x249   :  { %v1315_v54 = vmax.f32 %v1256_v6, 0.0 }
 0x24a   :  { %v1583_v19 = vpop.f32.mrf.mxu1 }
 0x24b   :  { %v1584_v52 = vadd.f32 %v3374_v23, %v1583_v19  ;;  %v1345_v1 = vpack.c.bf16 %v1315_v54, %v1315_v54 }
 0x24c   :  { %v1894_v33 = vpop.f32.mrf.mxu2 }
 0x24d   :  { %v1674_v22 = vmax.f32 %v1584_v52, 0.0  ;;  %v1895_v37 = vadd.f32 %v3255_v0, %v1894_v33 }
 0x24f   :  { %v1713_v56 = vpack.c.bf16 %v1674_v22, %v1673_v35  ;;  %2013 = vst.msk [vmem:[%s3706_s6 + $0xa8] sm:$0xff] %vm1991_vm6, %v1895_v37 }
 0x251   :  { %2274 = vmatmul.msk.bf16.gmra.mxu2 %vm1738_vm5, %v1713_v56 }
 0x252   :  { %v1586_v39 = vpop.f32.mrf.mxu1 }
 0x253   :  { %v1587_v45 = vadd.f32 %v3374_v23, %v1586_v39 }
 0x254   :  { %v1897_v43 = vpop.f32.mrf.mxu2 }
 0x255   :  { %v1898_v44 = vadd.f32 %v3255_v0, %v1897_v43  ;;  %2249 = vmatmul.msk.bf16.gmra.mxu3 %vm1379_vm3, %v1344_v42  ;;  %v1675_v49 = vmax.f32 %v1587_v45, 0.0 }
 0x257   :  { %2014 = vst.msk [vmem:[%s3706_s6 + $0xb0] sm:$0xff] %vm1991_vm6, %v1898_v44 }
 0x25a   :  { %v1588_v47 = vpop.f32.mrf.mxu1 }
 0x25b   :  { %v1589_v29 = vadd.f32 %v3374_v23, %v1588_v47 }
 0x25c   :  { %v1899_v48 = vpop.f32.mrf.mxu2 }
 0x25d   :  { %v1676_v51 = vmax.f32 %v1589_v29, 0.0  ;;  %v1900_v53 = vadd.f32 %v3255_v0, %v1899_v48 }
 0x25f   :  { %v1714_v59 = vpack.c.bf16 %v1676_v51, %v1675_v49  ;;  %2015 = vst.msk [vmem:[%s3706_s6 + $0xb8] sm:$0xff] %vm1991_vm6, %v1900_v53 }
 0x261   :  { %2275 = vmatmul.msk.bf16.gmra.mxu2 %vm1738_vm5, %v1714_v59 }
 0x262   :  { %v1591_v61 = vpop.f32.mrf.mxu1 }
 0x263   :  { %v1592_v2 = vadd.f32 %v3374_v23, %v1591_v61 }
 0x264   :  { %v1902_v58 = vpop.f32.mrf.mxu2 }
 0x265   :  { %v1903_v63 = vadd.f32 %v3255_v0, %v1902_v58  ;;  %2250 = vmatmul.msk.bf16.gmra.mxu3 %vm1379_vm3, %v1345_v1  ;;  %v1677_v24 = vmax.f32 %v1592_v2, 0.0 }
 0x267   :  { %2016 = vst.msk [vmem:[%s3706_s6 + $0xc0] sm:$0xff] %vm1991_vm6, %v1903_v63 }
 0x26a   :  { %v1593_v57 = vpop.f32.mrf.mxu1 }
 0x26b   :  { %v1594_v4 = vadd.f32 %v3374_v23, %v1593_v57 }
 0x26c   :  { %v1904_v5 = vpop.f32.mrf.mxu2 }
 0x26d   :  { %v1678_v8 = vmax.f32 %v1594_v4, 0.0  ;;  %v1905_v7 = vadd.f32 %v3255_v0, %v1904_v5 }
 0x26f   :  { %v1715_v9 = vpack.c.bf16 %v1678_v8, %v1677_v24  ;;  %2017 = vst.msk [vmem:[%s3706_s6 + $0xc8] sm:$0xff] %vm1991_vm6, %v1905_v7 }
 0x271   :  { %2276 = vmatmul.msk.bf16.gmra.mxu2 %vm1738_vm5, %v1715_v9 }
 0x274   :  { %v1907_v10 = vpop.f32.mrf.mxu2 }
 0x275   :  { %v1908_v11 = vadd.f32 %v3255_v0, %v1907_v10 }
 0x277   :  { %2018 = vst.msk [vmem:[%s3706_s6 + $0xd0] sm:$0xff] %vm1991_vm6, %v1908_v11 }
 0x278   :  { %v1596_v15 = vpop.f32.mrf.mxu3 }
 0x279   :  { %v1597_v62 = vadd.f32 %v3374_v23, %v1596_v15 }
 0x27b   :  { %v1679_v14 = vmax.f32 %v1597_v62, 0.0 }
 0x27c   :  { %v1909_v12 = vpop.f32.mrf.mxu2 }
 0x27d   :  { %v1910_v13 = vadd.f32 %v3255_v0, %v1909_v12 }
 0x27f   :  { %2019 = vst.msk [vmem:[%s3706_s6 + $0xd8] sm:$0xff] %vm1991_vm6, %v1910_v13 }
 0x280   :  { %v1598_v34 = vpop.f32.mrf.mxu3 }
 0x281   :  { %v1599_v16 = vadd.f32 %v3374_v23, %v1598_v34 }
 0x283   :  { %v1680_v17 = vmax.f32 %v1599_v16, 0.0 }
 0x284   :  { %v1912_v55 = vpop.f32.mrf.mxu2 }
 0x285   :  { %v1716_v18 = vpack.c.bf16 %v1680_v17, %v1679_v14  ;;  %v1913_v21 = vadd.f32 %v3255_v0, %v1912_v55 }
 0x287   :  { %2020 = vst.msk [vmem:[%s3706_s6 + $0xe0] sm:$0xff] %vm1991_vm6, %v1913_v21  ;;  %2277 = vmatmul.msk.bf16.gmra.mxu2 %vm1738_vm5, %v1716_v18 }
 0x288   :  { %v1601_v25 = vpop.f32.mrf.mxu3 }
 0x289   :  { %v1602_v27 = vadd.f32 %v3374_v23, %v1601_v25 }
 0x28b   :  { %v1681_v30 = vmax.f32 %v1602_v27, 0.0 }
 0x28c   :  { %v1914_v36 = vpop.f32.mrf.mxu2 }
 0x28d   :  { %v1915_v26 = vadd.f32 %v3255_v0, %v1914_v36 }
 0x28f   :  { %2021 = vst.msk [vmem:[%s3706_s6 + $0xe8] sm:$0xff] %vm1991_vm6, %v1915_v26 }
 0x290   :  { %v1603_v28 = vpop.f32.mrf.mxu3 }
 0x291   :  { %v1604_v40 = vadd.f32 %v3374_v23, %v1603_v28 }
 0x293   :  { %v1682_v31 = vmax.f32 %v1604_v40, 0.0 }
 0x294   :  { %v1917_v19 = vpop.f32.mrf.mxu2 }
 0x295   :  { %v1717_v20 = vpack.c.bf16 %v1682_v31, %v1681_v30  ;;  %v1918_v32 = vadd.f32 %v3255_v0, %v1917_v19 }
 0x297   :  { %2022 = vst.msk [vmem:[%s3706_s6 + $0xf0] sm:$0xff] %vm1991_vm6, %v1918_v32  ;;  %2278 = vmatmul.msk.bf16.vlgmr.msra.gmra.mxu3 %vm1738_vm5, %v1717_v20 }
 0x298   :  { %v1606_v52 = vpop.f32.mrf.mxu3 }
 0x299   :  { %v1607_v22 = vadd.f32 %v3374_v23, %v1606_v52 }
 0x29b   :  { %v1683_v50 = vmax.f32 %v1607_v22, 0.0 }
 0x29c   :  { %v1919_v33 = vpop.f32.mrf.mxu2 }
 0x29d   :  { %v1920_v35 = vadd.f32 %v3255_v0, %v1919_v33 }
 0x29f   :  { %2023 = vst.msk [vmem:[%s3706_s6 + $0xf8] sm:$0xff] %vm1991_vm6, %v1920_v35 }
 0x2a0   :  { %v1608_v37 = vpop.f32.mrf.mxu3 }
 0x2a1   :  { %v1609_v46 = vadd.f32 %v3374_v23, %v1608_v37  ;;  %v2805_v37 = vld [vmem:[%s3703_s5 + $0x2] ss:$0 sm:$0xff] }
 0x2a3   :  { %v1684_v56 = vmax.f32 %v1609_v46, 0.0 }
 0x2a4   :  { %v1922_v39 = vpop.f32.mrf.mxu2 }
 0x2a5   :  { %v1718_v41 = vpack.c.bf16 %v1684_v56, %v1683_v50  ;;  %v1923_v42 = vadd.f32 %v3255_v0, %v1922_v39 }
 0x2a7   :  { %2024 = vst.msk [vmem:[%s3706_s6 + $0x100] sm:$0xff] %vm1991_vm6, %v1923_v42  ;;  %2279 = vmatmul.msk.bf16.gmra.mxu3 %vm1738_vm5, %v1718_v41 }
 0x2a8   :  { %v1611_v3 = vpop.f32.mrf.mxu3 }
 0x2a9   :  { %v1612_v38 = vadd.f32 %v3374_v23, %v1611_v3 }
 0x2ab   :  { %v1685_v47 = vmax.f32 %v1612_v38, 0.0 }
 0x2ac   :  { %v1924_v43 = vpop.f32.mrf.mxu2 }
 0x2ad   :  { %v1925_v44 = vadd.f32 %v3255_v0, %v1924_v43 }
 0x2af   :  { %2025 = vst.msk [vmem:[%s3706_s6 + $0x108] sm:$0xff] %vm1991_vm6, %v1925_v44 }
 0x2b0   :  { %v1613_v60 = vpop.f32.mrf.mxu3 }
 0x2b1   :  { %v1614_v45 = vadd.f32 %v3374_v23, %v1613_v60 }
 0x2b3   :  { %v1686_v6 = vmax.f32 %v1614_v45, 0.0 }
 0x2b4   :  { %v1927_v29 = vpop.f32.mrf.mxu2 }
 0x2b5   :  { %v1719_v48 = vpack.c.bf16 %v1686_v6, %v1685_v47  ;;  %v1928_v49 = vadd.f32 %v3255_v0, %v1927_v29 }
 0x2b7   :  { %2026 = vst.msk [vmem:[%s3706_s6 + $0x110] sm:$0xff] %vm1991_vm6, %v1928_v49  ;;  %2280 = vmatmul.msk.bf16.gmra.mxu3 %vm1738_vm5, %v1719_v48 }
 0x2b8   :  { %v1616_v51 = vpop.f32.mrf.mxu3 }
 0x2b9   :  { %v1617_v59 = vadd.f32 %v3374_v23, %v1616_v51 }
 0x2bb   :  { %v1687_v58 = vmax.f32 %v1617_v59, 0.0 }
 0x2bc   :  { %v1929_v53 = vpop.f32.mrf.mxu2 }
 0x2bd   :  { %v1930_v54 = vadd.f32 %v3255_v0, %v1929_v53 }
 0x2bf   :  { %2027 = vst.msk [vmem:[%s3706_s6 + $0x118] sm:$0xff] %vm1991_vm6, %v1930_v54 }
 0x2c0   :  { %v1618_v61 = vpop.f32.mrf.mxu3 }
 0x2c1   :  { %v1619_v1 = vadd.f32 %v3374_v23, %v1618_v61 }
 0x2c3   :  { %v1688_v63 = vmax.f32 %v1619_v1, 0.0 }
 0x2c4   :  { %v1932_v2 = vpop.f32.mrf.mxu2 }
 0x2c5   :  { %v1720_v57 = vpack.c.bf16 %v1688_v63, %v1687_v58  ;;  %v1933_v4 = vadd.f32 %v3255_v0, %v1932_v2 }
 0x2c7   :  { %2028 = vst.msk [vmem:[%s3706_s6 + $0x120] sm:$0xff] %vm1991_vm6, %v1933_v4  ;;  %2281 = vmatmul.msk.bf16.gmra.mxu3 %vm1738_vm5, %v1720_v57 }
 0x2c8   :  { %v1621_v5 = vpop.f32.mrf.mxu3 }
 0x2c9   :  { %v1622_v7 = vadd.f32 %v3374_v23, %v1621_v5 }
 0x2cb   :  { %v1689_v11 = vmax.f32 %v1622_v7, 0.0 }
 0x2cc   :  { %v1934_v24 = vpop.f32.mrf.mxu2 }
 0x2cd   :  { %v1935_v8 = vadd.f32 %v3255_v0, %v1934_v24 }
 0x2cf   :  { %2029 = vst.msk [vmem:[%s3706_s6 + $0x128] sm:$0xff] %vm1991_vm6, %v1935_v8 }
 0x2d0   :  { %v1623_v9 = vpop.f32.mrf.mxu3 }
 0x2d1   :  { %v1624_v10 = vadd.f32 %v3374_v23, %v1623_v9 }
 0x2d3   :  { %v1690_v15 = vmax.f32 %v1624_v10, 0.0 }
 0x2d4   :  { %v1937_v12 = vpop.f32.mrf.mxu2 }
 0x2d5   :  { %v1721_v13 = vpack.c.bf16 %v1690_v15, %v1689_v11  ;;  %v1938_v62 = vadd.f32 %v3255_v0, %v1937_v12 }
 0x2d7   :  { %2030 = vst.msk [vmem:[%s3706_s6 + $0x130] sm:$0xff] %vm1991_vm6, %v1938_v62  ;;  %2282 = vmatmul.msk.bf16.gmra.mxu3 %vm1738_vm5, %v1721_v13 }
 0x2d8   :  { %v1626_v34 = vpop.f32.mrf.mxu3 }
 0x2d9   :  { %v1627_v17 = vadd.f32 %v3374_v23, %v1626_v34 }
 0x2db   :  { %v1691_v21 = vmax.f32 %v1627_v17, 0.0 }
 0x2dc   :  { %v1939_v16 = vpop.f32.mrf.mxu2 }
 0x2dd   :  { %v1940_v14 = vadd.f32 %v3255_v0, %v1939_v16 }
 0x2df   :  { %2031 = vst.msk [vmem:[%s3706_s6 + $0x138] sm:$0xff] %vm1991_vm6, %v1940_v14 }
 0x2e0   :  { %v1628_v55 = vpop.f32.mrf.mxu3 }
 0x2e1   :  { %v1629_v18 = vadd.f32 %v3374_v23, %v1628_v55 }
 0x2e3   :  { %v1692_v25 = vmax.f32 %v1629_v18, 0.0 }
 0x2e4   :  { %v1942_v36 = vpop.f32.mrf.mxu2 }
 0x2e5   :  { %v1722_v26 = vpack.c.bf16 %v1692_v25, %v1691_v21  ;;  %v1943_v27 = vadd.f32 %v3255_v0, %v1942_v36 }
 0x2e7   :  { %2032 = vst.msk [vmem:[%s3706_s6 + $0x140] sm:$0xff] %vm1991_vm6, %v1943_v27  ;;  %2283 = vmatmul.msk.bf16.gmra.mxu3 %vm1738_vm5, %v1722_v26 }
 0x2e8   :  { %v1631_v28 = vpop.f32.mrf.mxu3 }
 0x2e9   :  { %v1632_v30 = vadd.f32 %v3374_v23, %v1631_v28 }
 0x2eb   :  { %v1693_v20 = vmax.f32 %v1632_v30, 0.0 }
 0x2ec   :  { %v1944_v40 = vpop.f32.mrf.mxu2 }
 0x2ed   :  { %v1945_v31 = vadd.f32 %v3255_v0, %v1944_v40  ;;  %v1723_v52 = vpack.c.bf16 %v1693_v20, %v1693_v20 }
 0x2ef   :  { %2033 = vst.msk [vmem:[%s3706_s6 + $0x148] sm:$0xff] %vm1991_vm6, %v1945_v31 }
 0x2f0   :  { %v1633_v19 = vpop.f32.mrf.mxu3 }
 0x2f4   :  { %v1947_v32 = vpop.f32.mrf.mxu2 }
 0x2f5   :  { %v1948_v33 = vadd.f32 %v3255_v0, %v1947_v32 }
 0x2f7   :  { %2034 = vst.msk [vmem:[%s3706_s6 + $0x150] sm:$0xff] %vm1991_vm6, %v1948_v33  ;;  %2284 = vmatmul.msk.bf16.gmra.mxu3 %vm1738_vm5, %v1723_v52 }
 0x2fc   :  { %v1949_v23 = vpop.f32.mrf.mxu2 }
 0x2fd   :  { %v1950_v35 = vadd.f32 %v3255_v0, %v1949_v23 }
 0x2ff   :  { %2035 = vst.msk [vmem:[%s3706_s6 + $0x158] sm:$0xff] %vm1991_vm6, %v1950_v35 }
 0x30a   :  { %v1952_v22 = vpop.f32.mrf.mxu2 }
 0x30b   :  { %v1953_v46 = vadd.f32 %v2805_v37, %v1952_v22 }
 0x30d   :  { %2036 = vst.msk [vmem:[%s3706_s6 + $0x160] sm:$0xff] %vm1991_vm6, %v1953_v46 }
 0x312   :  { %v1954_v50 = vpop.f32.mrf.mxu2 }
 0x313   :  { %v1955_v56 = vadd.f32 %v2805_v37, %v1954_v50 }
 0x315   :  { %2037 = vst.msk [vmem:[%s3706_s6 + $0x168] sm:$0xff] %vm1991_vm6, %v1955_v56 }
 0x31a   :  { %v1957_v0 = vpop.f32.mrf.mxu3 }
 0x31b   :  { %v1958_v39 = vadd.f32 %v2805_v37, %v1957_v0 }
 0x31d   :  { %2038 = vst.msk [vmem:[%s3706_s6 + $0x170] sm:$0xff] %vm1991_vm6, %v1958_v39 }
 0x322   :  { %v1959_v41 = vpop.f32.mrf.mxu3 }
 0x323   :  { %v1960_v42 = vadd.f32 %v2805_v37, %v1959_v41 }
 0x325   :  { %2039 = vst.msk [vmem:[%s3706_s6 + $0x178] sm:$0xff] %vm1991_vm6, %v1960_v42 }
 0x32a   :  { %v1962_v3 = vpop.f32.mrf.mxu3 }
 0x32b   :  { %v1963_v43 = vadd.f32 %v2805_v37, %v1962_v3 }
 0x32d   :  { %2040 = vst.msk [vmem:[%s3706_s6 + $0x180] sm:$0xff] %vm1991_vm6, %v1963_v43 }
 0x332   :  { %v1964_v44 = vpop.f32.mrf.mxu3 }
 0x333   :  { %v1965_v38 = vadd.f32 %v2805_v37, %v1964_v44 }
 0x335   :  { %2041 = vst.msk [vmem:[%s3706_s6 + $0x188] sm:$0xff] %vm1991_vm6, %v1965_v38 }
 0x33a   :  { %v1967_v60 = vpop.f32.mrf.mxu3 }
 0x33b   :  { %v1968_v45 = vadd.f32 %v2805_v37, %v1967_v60 }
 0x33d   :  { %2042 = vst.msk [vmem:[%s3706_s6 + $0x190] sm:$0xff] %vm1991_vm6, %v1968_v45 }
 0x342   :  { %v1969_v47 = vpop.f32.mrf.mxu3 }
 0x343   :  { %v1970_v6 = vadd.f32 %v2805_v37, %v1969_v47 }
 0x345   :  { %2043 = vst.msk [vmem:[%s3706_s6 + $0x198] sm:$0xff] %vm1991_vm6, %v1970_v6 }
 0x34a   :  { %v1972_v29 = vpop.f32.mrf.mxu3 }
 0x34b   :  { %v1973_v48 = vadd.f32 %v2805_v37, %v1972_v29 }
 0x34d   :  { %2044 = vst.msk [vmem:[%s3706_s6 + $0x1a0] sm:$0xff] %vm1991_vm6, %v1973_v48 }
 0x352   :  { %v1974_v49 = vpop.f32.mrf.mxu3 }
 0x353   :  { %v1975_v51 = vadd.f32 %v2805_v37, %v1974_v49 }
 0x355   :  { %2045 = vst.msk [vmem:[%s3706_s6 + $0x1a8] sm:$0xff] %vm1991_vm6, %v1975_v51 }
 0x35a   :  { %v1977_v53 = vpop.f32.mrf.mxu3 }
 0x35b   :  { %v1978_v54 = vadd.f32 %v2805_v37, %v1977_v53 }
 0x35d   :  { %2046 = vst.msk [vmem:[%s3706_s6 + $0x1b0] sm:$0xff] %vm1991_vm6, %v1978_v54 }
 0x362   :  { %v1979_v59 = vpop.f32.mrf.mxu3 }
 0x363   :  { %v1980_v61 = vadd.f32 %v2805_v37, %v1979_v59 }
 0x365   :  { %2047 = vst.msk [vmem:[%s3706_s6 + $0x1b8] sm:$0xff] %vm1991_vm6, %v1980_v61 }
 0x36a   :  { %v1982_v1 = vpop.f32.mrf.mxu3 }
 0x36b   :  { %v1983_v58 = vadd.f32 %v2805_v37, %v1982_v1 }
 0x36d   :  { %2048 = vst.msk [vmem:[%s3706_s6 + $0x1c0] sm:$0xff] %vm1991_vm6, %v1983_v58 }
 0x372   :  { %v1984_v63 = vpop.f32.mrf.mxu3 }
 0x373   :  { %v1985_v2 = vadd.f32 %v2805_v37, %v1984_v63 }
 0x375   :  { %2049 = vst.msk [vmem:[%s3706_s6 + $0x1c8] sm:$0xff] %vm1991_vm6, %v1985_v2 }
 0x37a   :  { %v1987_v57 = vpop.f32.mrf.mxu3 }
 0x37b   :  { %v1988_v4 = vadd.f32 %v2805_v37, %v1987_v57 }
 0x37d   :  { %2050 = vst.msk [vmem:[%s3706_s6 + $0x1d0] sm:$0xff] %vm1991_vm6, %v1988_v4 }
 0x382   :  { %v1989_v5 = vpop.f32.mrf.mxu3 }

</bundles_post_ra>
